<compile_context>
chip_gen: v7x
topology: tpu7x:2x2x1
jax: 0.10.0
libtpu: 0.0.40
codegen_flags: <defaults>
</compile_context>

<pallas_src>
import functools
import math

import jax
import jax.numpy as jnp
from jax.experimental import pallas as pl
from jax.experimental.pallas import tpu as pltpu

LN_EPS = 1e-5
_INV_SQRT2 = 0.7071067811865476


def _layernorm_f32(x, g, b):
    # torch.nn.LayerNorm (eps=1e-5): stable centered two-pass variance, all in f32.
    mu = jnp.mean(x, axis=-1, keepdims=True)
    xc = x - mu
    var = jnp.mean(xc * xc, axis=-1, keepdims=True)
    return xc * jax.lax.rsqrt(var + LN_EPS) * g + b


def _transformer_kernel(x_ref,
                        ln1g_ref, ln1b_ref, wqkv_ref, wout_ref, bout_ref,
                        ln2g_ref, ln2b_ref, w1_ref, b1_ref, w2_ref, b2_ref,
                        o_ref, acc_ref,
                        *, heads, dim_head, scale):
    l = pl.program_id(1)
    BT, N, D = x_ref.shape
    R = BT * N
    H, dh = heads, dim_head
    inner = H * dh
    cdt = wqkv_ref.dtype                       # MXU operand dtype (bf16)

    # Layer 0: load this batch tile into the f32 carry (resident in VMEM across depth).
    @pl.when(l == 0)
    def _():
        acc_ref[...] = x_ref[...].reshape(R, D).astype(jnp.float32)

    x = acc_ref[...]                           # (R, D) f32 running activation

    # ---------------- PreNorm + Attention + residual ----------------
    xn = _layernorm_f32(x, ln1g_ref[0], ln1b_ref[0])

    # ONE lane-dense qkv projection: (R, D) x (D, 3*H*dh) -> (R, 3*H*dh), f32 accumulation.
    qkv = jnp.dot(xn.astype(cdt), wqkv_ref[0], preferred_element_type=jnp.float32)
    q = qkv[:, 0:inner] * scale                # fold attention scale into q (cheap)
    k = qkv[:, inner:2 * inner]
    v = qkv[:, 2 * inner:3 * inner]

    # Per-batch-element attention (softmax must not mix batch rows).  BT and H are small
    # static ints, so these Python loops fully unroll at trace time.
    # TODO(synk): for N >= ~512 replace the dense (H, N, N) softmax with a flash-style
    # key-tile loop (online max/sum in small scratch) so temporaries fit v7x's 64 MiB VMEM.
    ctx_rows = []
    for b in range(BT):
        r0 = b * N
        qh = jnp.stack([q[r0:r0 + N, h * dh:(h + 1) * dh] for h in range(H)], 0).astype(cdt)
        kh = jnp.stack([k[r0:r0 + N, h * dh:(h + 1) * dh] for h in range(H)], 0).astype(cdt)
        vh = jnp.stack([v[r0:r0 + N, h * dh:(h + 1) * dh] for h in range(H)], 0).astype(cdt)

        dots = jnp.einsum('hnd,hmd->hnm', qh, kh,
                          preferred_element_type=jnp.float32)            # (H, N, N) f32
        dots = dots - jnp.max(dots, axis=-1, keepdims=True)
        e = jnp.exp(dots)
        attn = e * (1.0 / jnp.sum(e, axis=-1, keepdims=True))            # exact softmax
        ctxh = jnp.einsum('hnm,hmd->hnd', attn.astype(cdt), vh,
                          preferred_element_type=jnp.float32)            # (H, N, dh) f32
        # merge heads back onto the lane axis -> (N, H*dh)   ('b h n d -> b n (h d)')
        ctx_rows.append(jnp.concatenate([ctxh[h] for h in range(H)], axis=-1))
    ctx = ctx_rows[0] if BT == 1 else jnp.concatenate(ctx_rows, axis=0)   # (R, H*dh)

    # Fused output projection over all heads: one (R, H*dh) x (H*dh, D) matmul.
    x = x + jnp.dot(ctx.astype(cdt), wout_ref[0],
                    preferred_element_type=jnp.float32) + bout_ref[0]

    # ---------------- PreNorm + FeedForward + residual ----------------
    # TODO(synk): for large mlp_dim on v7x (64 MiB VMEM/TC) tile w1/w2 along mlp_dim
    # (extra grid axis or pltpu.emit_pipeline) instead of whole-layer weight blocks.
    xn2 = _layernorm_f32(x, ln2g_ref[0], ln2b_ref[0])
    h1 = jnp.dot(xn2.astype(cdt), w1_ref[0],
                 preferred_element_type=jnp.float32) + b1_ref[0]
    # exact (erf-based) GELU, matching torch.nn.GELU default
    h1 = 0.5 * h1 * (1.0 + jax.lax.erf(h1 * _INV_SQRT2))
    y = jnp.dot(h1.astype(cdt), w2_ref[0],
                preferred_element_type=jnp.float32) + b2_ref[0]
    x = x + y

    acc_ref[...] = x                           # carry to next layer (stays in VMEM)

    @pl.when(l == pl.num_programs(1) - 1)
    def _():
        o_ref[...] = x.reshape(BT, N, D).astype(o_ref.dtype)   # single HBM writeback


def _pick_b_tile(B, N, target_rows=256, max_bt=8):
    # biggest divisor of B (capped) such that B_TILE*N reaches the MXU-friendly row count
    best = 1
    for cand in range(1, min(B, max_bt) + 1):
        if B % cand == 0:
            best = cand
            if cand * N >= target_rows:
                break
    return best


def _vmem_limit_bytes(params, b_tile, N, D, heads, x_itemsize):
    per_layer_w = sum(int(math.prod(a.shape[1:])) * a.dtype.itemsize
                      for a in params.values())
    R = b_tile * N
    inner3 = params["w_qkv"].shape[-1]
    mlp = params["w1"].shape[-1]
    interm_f32 = (3 * R * D + R * inner3 + 3 * heads * N * N
                  + R * (inner3 // 3) + 2 * R * mlp)
    est = (2 * per_layer_w                 # double-buffered per-layer weight blocks
           + 4 * R * D * x_itemsize        # double-buffered x / out blocks
           + 4 * R * D                     # f32 activation carry scratch
           + 4 * interm_f32)               # in-kernel f32 temporaries
    # 2x safety margin, clamped so the request is valid on v5e/v6e (128 MiB) and v7x (64 MiB)
    return int(max(32 * 1024 * 1024, min(64 * 1024 * 1024, 2 * est)))


def transformer_forward(x, params, *, heads, dim_head, b_tile=None):
    B, N, D = x.shape
    depth = params["w_qkv"].shape[0]
    inner = heads * dim_head
    assert params["w_qkv"].shape == (depth, D, 3 * inner)

    if b_tile is None:
        b_tile = _pick_b_tile(B, N)
    assert B % b_tile == 0, "batch must be divisible by b_tile"

    kern = functools.partial(_transformer_kernel, heads=heads, dim_head=dim_head,
                             scale=float(dim_head) ** -0.5)

    def wspec(arr):
        # per-layer whole-weight block, selected by the depth grid axis
        block = (1,) + arr.shape[1:]
        nz = arr.ndim - 1
        return pl.BlockSpec(block, lambda b, l, _n=nz: (l,) + (0,) * _n)

    grid_spec = pltpu.PrefetchScalarGridSpec(
        num_scalar_prefetch=0,
        grid=(B // b_tile, depth),
        in_specs=[
            pl.BlockSpec((b_tile, N, D), lambda b, l: (b, 0, 0)),   # x (DMA'd once per b)
            wspec(params["ln1_g"]), wspec(params["ln1_b"]),
            wspec(params["w_qkv"]), wspec(params["w_out"]), wspec(params["b_out"]),
            wspec(params["ln2_g"]), wspec(params["ln2_b"]),
            wspec(params["w1"]), wspec(params["b1"]),
            wspec(params["w2"]), wspec(params["b2"]),
        ],
        out_specs=pl.BlockSpec((b_tile, N, D), lambda b, l: (b, 0, 0)),
        scratch_shapes=[pltpu.VMEM((b_tile * N, D), jnp.float32)],   # activation carry
    )

    return pl.pallas_call(
        kern,
        out_shape=jax.ShapeDtypeStruct((B, N, D), x.dtype),
        grid_spec=grid_spec,
        compiler_params=pltpu.CompilerParams(
            dimension_semantics=("parallel", "arbitrary"),
            vmem_limit_bytes=_vmem_limit_bytes(params, b_tile, N, D, heads,
                                               x.dtype.itemsize)),
    )(x, params["ln1_g"], params["ln1_b"], params["w_qkv"], params["w_out"],
      params["b_out"], params["ln2_g"], params["ln2_b"], params["w1"],
      params["b1"], params["w2"], params["b2"])


# ---------------------------------------------------------------------------
# Deterministic parameter construction (depth-stacked, lane-dense weight layout)
#   w_qkv[l] = torch to_qkv.weight.T     : (D, 3*H*dh)
#   w_out[l] = torch to_out[0].weight.T  : (H*dh, D)
#   w1/w2[l] = torch Linear weights, transposed
# ---------------------------------------------------------------------------
def init_params(key, *, dim, depth, heads, dim_head, mlp_dim,
                weight_dtype=jnp.bfloat16, param_dtype=jnp.float32):
    inner = heads * dim_head
    ks = jax.random.split(key, 6)
    std = 0.02
    return {
        "ln1_g": jnp.ones((depth, 1, dim), param_dtype),
        "ln1_b": jnp.zeros((depth, 1, dim), param_dtype),
        "w_qkv": (std * jax.random.normal(ks[0], (depth, dim, 3 * inner))
                  ).astype(weight_dtype),
        "w_out": (std * jax.random.normal(ks[1], (depth, inner, dim))
                  ).astype(weight_dtype),
        "b_out": (std * jax.random.normal(ks[2], (depth, 1, dim))).astype(param_dtype),
        "ln2_g": jnp.ones((depth, 1, dim), param_dtype),
        "ln2_b": jnp.zeros((depth, 1, dim), param_dtype),
        "w1": (std * jax.random.normal(ks[3], (depth, dim, mlp_dim))).astype(weight_dtype),
        "b1": (std * jax.random.normal(ks[4], (depth, 1, mlp_dim))).astype(param_dtype),
        "w2": (std * jax.random.normal(ks[5], (depth, mlp_dim, dim))).astype(weight_dtype),
        "b2": jnp.zeros((depth, 1, dim), param_dtype),
    }


if __name__ == "__main__":
    # Small shapes implied by Transformer(dim, depth, heads, dim_head, mlp_dim)
    B, N = 2, 8
    dim, depth, heads, dim_head, mlp_dim = 32, 2, 4, 8, 64

    key = jax.random.PRNGKey(0)
    kx, kp = jax.random.split(key)
    x = jax.random.normal(kx, (B, N, dim), jnp.float32)
    params = init_params(kp, dim=dim, depth=depth, heads=heads,
                         dim_head=dim_head, mlp_dim=mlp_dim)

    out = transformer_forward(x, params, heads=heads, dim_head=dim_head)
    jax.block_until_ready(out)
    assert out.shape == (B, N, dim)
    print("KERNEL_OK")
</pallas_src>

<mosaic_0001>
module attributes {stable_mosaic.version = 11 : i64} {
  func.func @_transformer_kernel(%arg0: i32, %arg1: i32, %arg2: memref<2x8x32xf32, #tpu.memory_space<vmem>>, %arg3: memref<1x1x32xf32, #tpu.memory_space<vmem>>, %arg4: memref<1x1x32xf32, #tpu.memory_space<vmem>>, %arg5: memref<1x32x96xbf16, #tpu.memory_space<vmem>>, %arg6: memref<1x32x32xbf16, #tpu.memory_space<vmem>>, %arg7: memref<1x1x32xf32, #tpu.memory_space<vmem>>, %arg8: memref<1x1x32xf32, #tpu.memory_space<vmem>>, %arg9: memref<1x1x32xf32, #tpu.memory_space<vmem>>, %arg10: memref<1x32x64xbf16, #tpu.memory_space<vmem>>, %arg11: memref<1x1x64xf32, #tpu.memory_space<vmem>>, %arg12: memref<1x64x32xbf16, #tpu.memory_space<vmem>>, %arg13: memref<1x1x32xf32, #tpu.memory_space<vmem>>, %arg14: memref<2x8x32xf32, #tpu.memory_space<vmem>>, %arg15: memref<16x32xf32, #tpu.memory_space<vmem>>) attributes {dimension_semantics = [#tpu.dimension_semantics<parallel>, #tpu.dimension_semantics<arbitrary>], iteration_bounds = array<i64: 1, 2>, scalar_prefetch = 0 : i64, scratch_operands = 1 : i64, tpu.core_type = #tpu.core_type<tc>, window_params = [{transform_indices = @transform_0, window_bounds = array<i64: 2, 8, 32>}, {transform_indices = @transform_1, window_bounds = array<i64: 1, 1, 32>}, {transform_indices = @transform_2, window_bounds = array<i64: 1, 1, 32>}, {transform_indices = @transform_3, window_bounds = array<i64: 1, 32, 96>}, {transform_indices = @transform_4, window_bounds = array<i64: 1, 32, 32>}, {transform_indices = @transform_5, window_bounds = array<i64: 1, 1, 32>}, {transform_indices = @transform_6, window_bounds = array<i64: 1, 1, 32>}, {transform_indices = @transform_7, window_bounds = array<i64: 1, 1, 32>}, {transform_indices = @transform_8, window_bounds = array<i64: 1, 32, 64>}, {transform_indices = @transform_9, window_bounds = array<i64: 1, 1, 64>}, {transform_indices = @transform_10, window_bounds = array<i64: 1, 64, 32>}, {transform_indices = @transform_11, window_bounds = array<i64: 1, 1, 32>}, {transform_indices = @transform_12, window_bounds = array<i64: 2, 8, 32>}]} {
    %c0_i32 = arith.constant 0 : i32
    %0 = arith.cmpi eq, %arg1, %c0_i32 : i32
    %1 = arith.extui %0 : i1 to i32
    %c0_i32_0 = arith.constant 0 : i32
    %2 = arith.cmpi ne, %1, %c0_i32_0 : i32
    scf.if %2 {
      %c0_65 = arith.constant 0 : index
      %c0_66 = arith.constant 0 : index
      %c0_67 = arith.constant 0 : index
      %206 = vector.load %arg2[%c0_65, %c0_66, %c0_67] : memref<2x8x32xf32, #tpu.memory_space<vmem>>, vector<2x8x32xf32>
      %207 = vector.shape_cast %206 : vector<2x8x32xf32> to vector<16x32xf32>
      %c0_68 = arith.constant 0 : index
      %c0_69 = arith.constant 0 : index
      %208 = vector.load %arg15[%c0_68, %c0_69] : memref<16x32xf32, #tpu.memory_space<vmem>>, vector<16x32xf32>
      tpu.vector_store %arg15[%c0_68, %c0_69], %207 {strides = array<i32>} : memref<16x32xf32, #tpu.memory_space<vmem>>, vector<16x32xf32>,
    } else {
    }
    %c0 = arith.constant 0 : index
    %c0_1 = arith.constant 0 : index
    %3 = vector.load %arg15[%c0, %c0_1] : memref<16x32xf32, #tpu.memory_space<vmem>>, vector<16x32xf32>
    %c0_2 = arith.constant 0 : index
    %c0_3 = arith.constant 0 : index
    %c0_4 = arith.constant 0 : index
    %4 = vector.load %arg3[%c0_2, %c0_3, %c0_4] : memref<1x1x32xf32, #tpu.memory_space<vmem>>, vector<1x1x32xf32>
    %5 = vector.shape_cast %4 : vector<1x1x32xf32> to vector<1x32xf32>
    %c0_5 = arith.constant 0 : index
    %c0_6 = arith.constant 0 : index
    %c0_7 = arith.constant 0 : index
    %6 = vector.load %arg4[%c0_5, %c0_6, %c0_7] : memref<1x1x32xf32, #tpu.memory_space<vmem>>, vector<1x1x32xf32>
    %7 = vector.shape_cast %6 : vector<1x1x32xf32> to vector<1x32xf32>
    %cst = arith.constant dense<0.000000e+00> : vector<16xf32>
    %8 = vector.multi_reduction <add>, %3, %cst [1] : vector<16x32xf32> to vector<16xf32>
    %9 = vector.shape_cast %8 : vector<16xf32> to vector<16x1xf32>
    %cst_8 = arith.constant 3.200000e+01 : f32
    %10 = vector.broadcast %cst_8 : f32 to vector<16x1xf32>
    %11 = arith.divf %9, %10 : vector<16x1xf32>
    %12 = vector.broadcast %11 : vector<16x1xf32> to vector<16x32xf32>
    %13 = arith.subf %3, %12 : vector<16x32xf32>
    %14 = arith.mulf %13, %13 : vector<16x32xf32>
    %cst_9 = arith.constant dense<0.000000e+00> : vector<16xf32>
    %15 = vector.multi_reduction <add>, %14, %cst_9 [1] : vector<16x32xf32> to vector<16xf32>
    %16 = vector.shape_cast %15 : vector<16xf32> to vector<16x1xf32>
    %cst_10 = arith.constant 3.200000e+01 : f32
    %17 = vector.broadcast %cst_10 : f32 to vector<16x1xf32>
    %18 = arith.divf %16, %17 : vector<16x1xf32>
    %cst_11 = arith.constant 9.99999974E-6 : f32
    %19 = vector.broadcast %cst_11 : f32 to vector<16x1xf32>
    %20 = arith.addf %18, %19 : vector<16x1xf32>
    %21 = math.rsqrt %20 : vector<16x1xf32>
    %22 = vector.broadcast %21 : vector<16x1xf32> to vector<16x32xf32>
    %23 = arith.mulf %13, %22 : vector<16x32xf32>
    %24 = vector.broadcast %5 : vector<1x32xf32> to vector<16x32xf32>
    %25 = arith.mulf %23, %24 : vector<16x32xf32>
    %26 = vector.broadcast %7 : vector<1x32xf32> to vector<16x32xf32>
    %27 = arith.addf %25, %26 : vector<16x32xf32>
    %28 = arith.truncf %27 : vector<16x32xf32> to vector<16x32xbf16>
    %c0_12 = arith.constant 0 : index
    %c0_13 = arith.constant 0 : index
    %c0_14 = arith.constant 0 : index
    %29 = vector.load %arg5[%c0_12, %c0_13, %c0_14] : memref<1x32x96xbf16, #tpu.memory_space<vmem>>, vector<1x32x96xbf16>
    %30 = vector.shape_cast %29 : vector<1x32x96xbf16> to vector<32x96xbf16>
    %cst_15 = arith.constant dense<0.000000e+00> : vector<16x96xf32>
    %31 = tpu.matmul %28, %30, %cst_15 {dimension_numbers = #tpu.dot_dimension_numbers<[1], [0], [0], [1], [0, 0, 1, 1], [], []>} : vector<16x32xbf16>, vector<32x96xbf16>, vector<16x96xf32> -> vector<16x96xf32>
    %32 = vector.extract_strided_slice %31 {offsets = [0, 0], sizes = [16, 32], strides = [1, 1]} : vector<16x96xf32> to vector<16x32xf32>
    %cst_16 = arith.constant 0.353553385 : f32
    %33 = vector.broadcast %cst_16 : f32 to vector<16x32xf32>
    %34 = arith.mulf %32, %33 : vector<16x32xf32>
    %35 = vector.extract_strided_slice %31 {offsets = [0, 32], sizes = [16, 32], strides = [1, 1]} : vector<16x96xf32> to vector<16x32xf32>
    %36 = vector.extract_strided_slice %31 {offsets = [0, 64], sizes = [16, 32], strides = [1, 1]} : vector<16x96xf32> to vector<16x32xf32>
    %37 = vector.extract_strided_slice %34 {offsets = [0, 0], sizes = [8, 8], strides = [1, 1]} : vector<16x32xf32> to vector<8x8xf32>
    %38 = vector.extract_strided_slice %34 {offsets = [0, 8], sizes = [8, 8], strides = [1, 1]} : vector<16x32xf32> to vector<8x8xf32>
    %39 = vector.extract_strided_slice %34 {offsets = [0, 16], sizes = [8, 8], strides = [1, 1]} : vector<16x32xf32> to vector<8x8xf32>
    %40 = vector.extract_strided_slice %34 {offsets = [0, 24], sizes = [8, 8], strides = [1, 1]} : vector<16x32xf32> to vector<8x8xf32>
    %41 = vector.shape_cast %37 : vector<8x8xf32> to vector<1x8x8xf32>
    %42 = vector.shape_cast %38 : vector<8x8xf32> to vector<1x8x8xf32>
    %43 = vector.shape_cast %39 : vector<8x8xf32> to vector<1x8x8xf32>
    %44 = vector.shape_cast %40 : vector<8x8xf32> to vector<1x8x8xf32>
    %45 = tpu.concatenate %41, %42, %43, %44 in 0 : vector<1x8x8xf32>, vector<1x8x8xf32>, vector<1x8x8xf32>, vector<1x8x8xf32> -> vector<4x8x8xf32>
    %46 = arith.truncf %45 : vector<4x8x8xf32> to vector<4x8x8xbf16>
    %47 = vector.extract_strided_slice %35 {offsets = [0, 0], sizes = [8, 8], strides = [1, 1]} : vector<16x32xf32> to vector<8x8xf32>
    %48 = vector.extract_strided_slice %35 {offsets = [0, 8], sizes = [8, 8], strides = [1, 1]} : vector<16x32xf32> to vector<8x8xf32>
    %49 = vector.extract_strided_slice %35 {offsets = [0, 16], sizes = [8, 8], strides = [1, 1]} : vector<16x32xf32> to vector<8x8xf32>
    %50 = vector.extract_strided_slice %35 {offsets = [0, 24], sizes = [8, 8], strides = [1, 1]} : vector<16x32xf32> to vector<8x8xf32>
    %51 = vector.shape_cast %47 : vector<8x8xf32> to vector<1x8x8xf32>
    %52 = vector.shape_cast %48 : vector<8x8xf32> to vector<1x8x8xf32>
    %53 = vector.shape_cast %49 : vector<8x8xf32> to vector<1x8x8xf32>
    %54 = vector.shape_cast %50 : vector<8x8xf32> to vector<1x8x8xf32>
    %55 = tpu.concatenate %51, %52, %53, %54 in 0 : vector<1x8x8xf32>, vector<1x8x8xf32>, vector<1x8x8xf32>, vector<1x8x8xf32> -> vector<4x8x8xf32>
    %56 = arith.truncf %55 : vector<4x8x8xf32> to vector<4x8x8xbf16>
    %57 = vector.extract_strided_slice %36 {offsets = [0, 0], sizes = [8, 8], strides = [1, 1]} : vector<16x32xf32> to vector<8x8xf32>
    %58 = vector.extract_strided_slice %36 {offsets = [0, 8], sizes = [8, 8], strides = [1, 1]} : vector<16x32xf32> to vector<8x8xf32>
    %59 = vector.extract_strided_slice %36 {offsets = [0, 16], sizes = [8, 8], strides = [1, 1]} : vector<16x32xf32> to vector<8x8xf32>
    %60 = vector.extract_strided_slice %36 {offsets = [0, 24], sizes = [8, 8], strides = [1, 1]} : vector<16x32xf32> to vector<8x8xf32>
    %61 = vector.shape_cast %57 : vector<8x8xf32> to vector<1x8x8xf32>
    %62 = vector.shape_cast %58 : vector<8x8xf32> to vector<1x8x8xf32>
    %63 = vector.shape_cast %59 : vector<8x8xf32> to vector<1x8x8xf32>
    %64 = vector.shape_cast %60 : vector<8x8xf32> to vector<1x8x8xf32>
    %65 = tpu.concatenate %61, %62, %63, %64 in 0 : vector<1x8x8xf32>, vector<1x8x8xf32>, vector<1x8x8xf32>, vector<1x8x8xf32> -> vector<4x8x8xf32>
    %66 = arith.truncf %65 : vector<4x8x8xf32> to vector<4x8x8xbf16>
    "tpu.trace_start"() <{level = 10 : i32, message = "hnd,hmd->hnm"}> : () -> ()
    %cst_17 = arith.constant dense<0.000000e+00> : vector<4x8x8xf32>
    %67 = tpu.matmul %46, %56, %cst_17 {dimension_numbers = #tpu.dot_dimension_numbers<[2], [2], [1], [1], [0, 0, 0, 1, 1, 1], [0], [0]>} : vector<4x8x8xbf16>, vector<4x8x8xbf16>, vector<4x8x8xf32> -> vector<4x8x8xf32>
    "tpu.trace_stop"() : () -> ()
    %cst_18 = arith.constant dense<0xFF800000> : vector<4x8xf32>
    %68 = vector.multi_reduction <maximumf>, %67, %cst_18 [2] : vector<4x8x8xf32> to vector<4x8xf32>
    %69 = vector.shape_cast %68 : vector<4x8xf32> to vector<4x8x1xf32>
    %70 = vector.broadcast %69 : vector<4x8x1xf32> to vector<4x8x8xf32>
    %71 = arith.subf %67, %70 : vector<4x8x8xf32>
    %72 = math.exp %71 : vector<4x8x8xf32>
    %cst_19 = arith.constant dense<0.000000e+00> : vector<4x8xf32>
    %73 = vector.multi_reduction <add>, %72, %cst_19 [2] : vector<4x8x8xf32> to vector<4x8xf32>
    %74 = vector.shape_cast %73 : vector<4x8xf32> to vector<4x8x1xf32>
    %cst_20 = arith.constant 1.000000e+00 : f32
    %75 = vector.broadcast %cst_20 : f32 to vector<4x8x1xf32>
    %76 = arith.divf %75, %74 : vector<4x8x1xf32>
    %77 = vector.broadcast %76 : vector<4x8x1xf32> to vector<4x8x8xf32>
    %78 = arith.mulf %72, %77 : vector<4x8x8xf32>
    %79 = arith.truncf %78 : vector<4x8x8xf32> to vector<4x8x8xbf16>
    "tpu.trace_start"() <{level = 10 : i32, message = "hnm,hmd->hnd"}> : () -> ()
    %cst_21 = arith.constant dense<0.000000e+00> : vector<4x8x8xf32>
    %80 = tpu.matmul %79, %66, %cst_21 {dimension_numbers = #tpu.dot_dimension_numbers<[2], [1], [1], [2], [0, 0, 0, 1, 1, 2], [0], [0]>} : vector<4x8x8xbf16>, vector<4x8x8xbf16>, vector<4x8x8xf32> -> vector<4x8x8xf32>
    "tpu.trace_stop"() : () -> ()
    %81 = vector.extract_strided_slice %80 {offsets = [0, 0, 0], sizes = [1, 8, 8], strides = [1, 1, 1]} : vector<4x8x8xf32> to vector<1x8x8xf32>
    %82 = vector.shape_cast %81 : vector<1x8x8xf32> to vector<8x8xf32>
    %83 = vector.extract_strided_slice %80 {offsets = [1, 0, 0], sizes = [1, 8, 8], strides = [1, 1, 1]} : vector<4x8x8xf32> to vector<1x8x8xf32>
    %84 = vector.shape_cast %83 : vector<1x8x8xf32> to vector<8x8xf32>
    %85 = vector.extract_strided_slice %80 {offsets = [2, 0, 0], sizes = [1, 8, 8], strides = [1, 1, 1]} : vector<4x8x8xf32> to vector<1x8x8xf32>
    %86 = vector.shape_cast %85 : vector<1x8x8xf32> to vector<8x8xf32>
    %87 = vector.extract_strided_slice %80 {offsets = [3, 0, 0], sizes = [1, 8, 8], strides = [1, 1, 1]} : vector<4x8x8xf32> to vector<1x8x8xf32>
    %88 = vector.shape_cast %87 : vector<1x8x8xf32> to vector<8x8xf32>
    %89 = tpu.concatenate %82, %84, %86, %88 in 1 : vector<8x8xf32>, vector<8x8xf32>, vector<8x8xf32>, vector<8x8xf32> -> vector<8x32xf32>
    %90 = vector.extract_strided_slice %34 {offsets = [8, 0], sizes = [8, 8], strides = [1, 1]} : vector<16x32xf32> to vector<8x8xf32>
    %91 = vector.extract_strided_slice %34 {offsets = [8, 8], sizes = [8, 8], strides = [1, 1]} : vector<16x32xf32> to vector<8x8xf32>
    %92 = vector.extract_strided_slice %34 {offsets = [8, 16], sizes = [8, 8], strides = [1, 1]} : vector<16x32xf32> to vector<8x8xf32>
    %93 = vector.extract_strided_slice %34 {offsets = [8, 24], sizes = [8, 8], strides = [1, 1]} : vector<16x32xf32> to vector<8x8xf32>
    %94 = vector.shape_cast %90 : vector<8x8xf32> to vector<1x8x8xf32>
    %95 = vector.shape_cast %91 : vector<8x8xf32> to vector<1x8x8xf32>
    %96 = vector.shape_cast %92 : vector<8x8xf32> to vector<1x8x8xf32>
    %97 = vector.shape_cast %93 : vector<8x8xf32> to vector<1x8x8xf32>
    %98 = tpu.concatenate %94, %95, %96, %97 in 0 : vector<1x8x8xf32>, vector<1x8x8xf32>, vector<1x8x8xf32>, vector<1x8x8xf32> -> vector<4x8x8xf32>
    %99 = arith.truncf %98 : vector<4x8x8xf32> to vector<4x8x8xbf16>
    %100 = vector.extract_strided_slice %35 {offsets = [8, 0], sizes = [8, 8], strides = [1, 1]} : vector<16x32xf32> to vector<8x8xf32>
    %101 = vector.extract_strided_slice %35 {offsets = [8, 8], sizes = [8, 8], strides = [1, 1]} : vector<16x32xf32> to vector<8x8xf32>
    %102 = vector.extract_strided_slice %35 {offsets = [8, 16], sizes = [8, 8], strides = [1, 1]} : vector<16x32xf32> to vector<8x8xf32>
    %103 = vector.extract_strided_slice %35 {offsets = [8, 24], sizes = [8, 8], strides = [1, 1]} : vector<16x32xf32> to vector<8x8xf32>
    %104 = vector.shape_cast %100 : vector<8x8xf32> to vector<1x8x8xf32>
    %105 = vector.shape_cast %101 : vector<8x8xf32> to vector<1x8x8xf32>
    %106 = vector.shape_cast %102 : vector<8x8xf32> to vector<1x8x8xf32>
    %107 = vector.shape_cast %103 : vector<8x8xf32> to vector<1x8x8xf32>
    %108 = tpu.concatenate %104, %105, %106, %107 in 0 : vector<1x8x8xf32>, vector<1x8x8xf32>, vector<1x8x8xf32>, vector<1x8x8xf32> -> vector<4x8x8xf32>
    %109 = arith.truncf %108 : vector<4x8x8xf32> to vector<4x8x8xbf16>
    %110 = vector.extract_strided_slice %36 {offsets = [8, 0], sizes = [8, 8], strides = [1, 1]} : vector<16x32xf32> to vector<8x8xf32>
    %111 = vector.extract_strided_slice %36 {offsets = [8, 8], sizes = [8, 8], strides = [1, 1]} : vector<16x32xf32> to vector<8x8xf32>
    %112 = vector.extract_strided_slice %36 {offsets = [8, 16], sizes = [8, 8], strides = [1, 1]} : vector<16x32xf32> to vector<8x8xf32>
    %113 = vector.extract_strided_slice %36 {offsets = [8, 24], sizes = [8, 8], strides = [1, 1]} : vector<16x32xf32> to vector<8x8xf32>
    %114 = vector.shape_cast %110 : vector<8x8xf32> to vector<1x8x8xf32>
    %115 = vector.shape_cast %111 : vector<8x8xf32> to vector<1x8x8xf32>
    %116 = vector.shape_cast %112 : vector<8x8xf32> to vector<1x8x8xf32>
    %117 = vector.shape_cast %113 : vector<8x8xf32> to vector<1x8x8xf32>
    %118 = tpu.concatenate %114, %115, %116, %117 in 0 : vector<1x8x8xf32>, vector<1x8x8xf32>, vector<1x8x8xf32>, vector<1x8x8xf32> -> vector<4x8x8xf32>
    %119 = arith.truncf %118 : vector<4x8x8xf32> to vector<4x8x8xbf16>
    "tpu.trace_start"() <{level = 10 : i32, message = "hnd,hmd->hnm"}> : () -> ()
    %cst_22 = arith.constant dense<0.000000e+00> : vector<4x8x8xf32>
    %120 = tpu.matmul %99, %109, %cst_22 {dimension_numbers = #tpu.dot_dimension_numbers<[2], [2], [1], [1], [0, 0, 0, 1, 1, 1], [0], [0]>} : vector<4x8x8xbf16>, vector<4x8x8xbf16>, vector<4x8x8xf32> -> vector<4x8x8xf32>
    "tpu.trace_stop"() : () -> ()
    %cst_23 = arith.constant dense<0xFF800000> : vector<4x8xf32>
    %121 = vector.multi_reduction <maximumf>, %120, %cst_23 [2] : vector<4x8x8xf32> to vector<4x8xf32>
    %122 = vector.shape_cast %121 : vector<4x8xf32> to vector<4x8x1xf32>
    %123 = vector.broadcast %122 : vector<4x8x1xf32> to vector<4x8x8xf32>
    %124 = arith.subf %120, %123 : vector<4x8x8xf32>
    %125 = math.exp %124 : vector<4x8x8xf32>
    %cst_24 = arith.constant dense<0.000000e+00> : vector<4x8xf32>
    %126 = vector.multi_reduction <add>, %125, %cst_24 [2] : vector<4x8x8xf32> to vector<4x8xf32>
    %127 = vector.shape_cast %126 : vector<4x8xf32> to vector<4x8x1xf32>
    %cst_25 = arith.constant 1.000000e+00 : f32
    %128 = vector.broadcast %cst_25 : f32 to vector<4x8x1xf32>
    %129 = arith.divf %128, %127 : vector<4x8x1xf32>
    %130 = vector.broadcast %129 : vector<4x8x1xf32> to vector<4x8x8xf32>
    %131 = arith.mulf %125, %130 : vector<4x8x8xf32>
    %132 = arith.truncf %131 : vector<4x8x8xf32> to vector<4x8x8xbf16>
    "tpu.trace_start"() <{level = 10 : i32, message = "hnm,hmd->hnd"}> : () -> ()
    %cst_26 = arith.constant dense<0.000000e+00> : vector<4x8x8xf32>
    %133 = tpu.matmul %132, %119, %cst_26 {dimension_numbers = #tpu.dot_dimension_numbers<[2], [1], [1], [2], [0, 0, 0, 1, 1, 2], [0], [0]>} : vector<4x8x8xbf16>, vector<4x8x8xbf16>, vector<4x8x8xf32> -> vector<4x8x8xf32>
    "tpu.trace_stop"() : () -> ()
    %134 = vector.extract_strided_slice %133 {offsets = [0, 0, 0], sizes = [1, 8, 8], strides = [1, 1, 1]} : vector<4x8x8xf32> to vector<1x8x8xf32>
    %135 = vector.shape_cast %134 : vector<1x8x8xf32> to vector<8x8xf32>
    %136 = vector.extract_strided_slice %133 {offsets = [1, 0, 0], sizes = [1, 8, 8], strides = [1, 1, 1]} : vector<4x8x8xf32> to vector<1x8x8xf32>
    %137 = vector.shape_cast %136 : vector<1x8x8xf32> to vector<8x8xf32>
    %138 = vector.extract_strided_slice %133 {offsets = [2, 0, 0], sizes = [1, 8, 8], strides = [1, 1, 1]} : vector<4x8x8xf32> to vector<1x8x8xf32>
    %139 = vector.shape_cast %138 : vector<1x8x8xf32> to vector<8x8xf32>
    %140 = vector.extract_strided_slice %133 {offsets = [3, 0, 0], sizes = [1, 8, 8], strides = [1, 1, 1]} : vector<4x8x8xf32> to vector<1x8x8xf32>
    %141 = vector.shape_cast %140 : vector<1x8x8xf32> to vector<8x8xf32>
    %142 = tpu.concatenate %135, %137, %139, %141 in 1 : vector<8x8xf32>, vector<8x8xf32>, vector<8x8xf32>, vector<8x8xf32> -> vector<8x32xf32>
    %143 = tpu.concatenate %89, %142 in 0 : vector<8x32xf32>, vector<8x32xf32> -> vector<16x32xf32>
    %144 = arith.truncf %143 : vector<16x32xf32> to vector<16x32xbf16>
    %c0_27 = arith.constant 0 : index
    %c0_28 = arith.constant 0 : index
    %c0_29 = arith.constant 0 : index
    %145 = vector.load %arg6[%c0_27, %c0_28, %c0_29] : memref<1x32x32xbf16, #tpu.memory_space<vmem>>, vector<1x32x32xbf16>
    %146 = vector.shape_cast %145 : vector<1x32x32xbf16> to vector<32x32xbf16>
    %cst_30 = arith.constant dense<0.000000e+00> : vector<16x32xf32>
    %147 = tpu.matmul %144, %146, %cst_30 {dimension_numbers = #tpu.dot_dimension_numbers<[1], [0], [0], [1], [0, 0, 1, 1], [], []>} : vector<16x32xbf16>, vector<32x32xbf16>, vector<16x32xf32> -> vector<16x32xf32>
    %148 = arith.addf %3, %147 : vector<16x32xf32>
    %c0_31 = arith.constant 0 : index
    %c0_32 = arith.constant 0 : index
    %c0_33 = arith.constant 0 : index
    %149 = vector.load %arg7[%c0_31, %c0_32, %c0_33] : memref<1x1x32xf32, #tpu.memory_space<vmem>>, vector<1x1x32xf32>
    %150 = vector.shape_cast %149 : vector<1x1x32xf32> to vector<1x32xf32>
    %151 = vector.broadcast %150 : vector<1x32xf32> to vector<16x32xf32>
    %152 = arith.addf %148, %151 : vector<16x32xf32>
    %c0_34 = arith.constant 0 : index
    %c0_35 = arith.constant 0 : index
    %c0_36 = arith.constant 0 : index
    %153 = vector.load %arg8[%c0_34, %c0_35, %c0_36] : memref<1x1x32xf32, #tpu.memory_space<vmem>>, vector<1x1x32xf32>
    %154 = vector.shape_cast %153 : vector<1x1x32xf32> to vector<1x32xf32>
    %c0_37 = arith.constant 0 : index
    %c0_38 = arith.constant 0 : index
    %c0_39 = arith.constant 0 : index
    %155 = vector.load %arg9[%c0_37, %c0_38, %c0_39] : memref<1x1x32xf32, #tpu.memory_space<vmem>>, vector<1x1x32xf32>
    %156 = vector.shape_cast %155 : vector<1x1x32xf32> to vector<1x32xf32>
    %cst_40 = arith.constant dense<0.000000e+00> : vector<16xf32>
    %157 = vector.multi_reduction <add>, %152, %cst_40 [1] : vector<16x32xf32> to vector<16xf32>
    %158 = vector.shape_cast %157 : vector<16xf32> to vector<16x1xf32>
    %cst_41 = arith.constant 3.200000e+01 : f32
    %159 = vector.broadcast %cst_41 : f32 to vector<16x1xf32>
    %160 = arith.divf %158, %159 : vector<16x1xf32>
    %161 = vector.broadcast %160 : vector<16x1xf32> to vector<16x32xf32>
    %162 = arith.subf %152, %161 : vector<16x32xf32>
    %163 = arith.mulf %162, %162 : vector<16x32xf32>
    %cst_42 = arith.constant dense<0.000000e+00> : vector<16xf32>
    %164 = vector.multi_reduction <add>, %163, %cst_42 [1] : vector<16x32xf32> to vector<16xf32>
    %165 = vector.shape_cast %164 : vector<16xf32> to vector<16x1xf32>
    %cst_43 = arith.constant 3.200000e+01 : f32
    %166 = vector.broadcast %cst_43 : f32 to vector<16x1xf32>
    %167 = arith.divf %165, %166 : vector<16x1xf32>
    %cst_44 = arith.constant 9.99999974E-6 : f32
    %168 = vector.broadcast %cst_44 : f32 to vector<16x1xf32>
    %169 = arith.addf %167, %168 : vector<16x1xf32>
    %170 = math.rsqrt %169 : vector<16x1xf32>
    %171 = vector.broadcast %170 : vector<16x1xf32> to vector<16x32xf32>
    %172 = arith.mulf %162, %171 : vector<16x32xf32>
    %173 = vector.broadcast %154 : vector<1x32xf32> to vector<16x32xf32>
    %174 = arith.mulf %172, %173 : vector<16x32xf32>
    %175 = vector.broadcast %156 : vector<1x32xf32> to vector<16x32xf32>
    %176 = arith.addf %174, %175 : vector<16x32xf32>
    %177 = arith.truncf %176 : vector<16x32xf32> to vector<16x32xbf16>
    %c0_45 = arith.constant 0 : index
    %c0_46 = arith.constant 0 : index
    %c0_47 = arith.constant 0 : index
    %178 = vector.load %arg10[%c0_45, %c0_46, %c0_47] : memref<1x32x64xbf16, #tpu.memory_space<vmem>>, vector<1x32x64xbf16>
    %179 = vector.shape_cast %178 : vector<1x32x64xbf16> to vector<32x64xbf16>
    %cst_48 = arith.constant dense<0.000000e+00> : vector<16x64xf32>
    %180 = tpu.matmul %177, %179, %cst_48 {dimension_numbers = #tpu.dot_dimension_numbers<[1], [0], [0], [1], [0, 0, 1, 1], [], []>} : vector<16x32xbf16>, vector<32x64xbf16>, vector<16x64xf32> -> vector<16x64xf32>
    %c0_49 = arith.constant 0 : index
    %c0_50 = arith.constant 0 : index
    %c0_51 = arith.constant 0 : index
    %181 = vector.load %arg11[%c0_49, %c0_50, %c0_51] : memref<1x1x64xf32, #tpu.memory_space<vmem>>, vector<1x1x64xf32>
    %182 = vector.shape_cast %181 : vector<1x1x64xf32> to vector<1x64xf32>
    %183 = vector.broadcast %182 : vector<1x64xf32> to vector<16x64xf32>
    %184 = arith.addf %180, %183 : vector<16x64xf32>
    %cst_52 = arith.constant 5.000000e-01 : f32
    %185 = vector.broadcast %cst_52 : f32 to vector<16x64xf32>
    %186 = arith.mulf %185, %184 : vector<16x64xf32>
    %cst_53 = arith.constant 0.707106769 : f32
    %187 = vector.broadcast %cst_53 : f32 to vector<16x64xf32>
    %188 = arith.mulf %184, %187 : vector<16x64xf32>
    %189 = math.erf %188 : vector<16x64xf32>
    %cst_54 = arith.constant 1.000000e+00 : f32
    %190 = vector.broadcast %cst_54 : f32 to vector<16x64xf32>
    %191 = arith.addf %190, %189 : vector<16x64xf32>
    %192 = arith.mulf %186, %191 : vector<16x64xf32>
    %193 = arith.truncf %192 : vector<16x64xf32> to vector<16x64xbf16>
    %c0_55 = arith.constant 0 : index
    %c0_56 = arith.constant 0 : index
    %c0_57 = arith.constant 0 : index
    %194 = vector.load %arg12[%c0_55, %c0_56, %c0_57] : memref<1x64x32xbf16, #tpu.memory_space<vmem>>, vector<1x64x32xbf16>
    %195 = vector.shape_cast %194 : vector<1x64x32xbf16> to vector<64x32xbf16>
    %cst_58 = arith.constant dense<0.000000e+00> : vector<16x32xf32>
    %196 = tpu.matmul %193, %195, %cst_58 {dimension_numbers = #tpu.dot_dimension_numbers<[1], [0], [0], [1], [0, 0, 1, 1], [], []>} : vector<16x64xbf16>, vector<64x32xbf16>, vector<16x32xf32> -> vector<16x32xf32>
    %c0_59 = arith.constant 0 : index
    %c0_60 = arith.constant 0 : index
    %c0_61 = arith.constant 0 : index
    %197 = vector.load %arg13[%c0_59, %c0_60, %c0_61] : memref<1x1x32xf32, #tpu.memory_space<vmem>>, vector<1x1x32xf32>
    %198 = vector.shape_cast %197 : vector<1x1x32xf32> to vector<1x32xf32>
    %199 = vector.broadcast %198 : vector<1x32xf32> to vector<16x32xf32>
    %200 = arith.addf %196, %199 : vector<16x32xf32>
    %201 = arith.addf %152, %200 : vector<16x32xf32>
    %c0_62 = arith.constant 0 : index
    %c0_63 = arith.constant 0 : index
    %202 = vector.load %arg15[%c0_62, %c0_63] : memref<16x32xf32, #tpu.memory_space<vmem>>, vector<16x32xf32>
    tpu.vector_store %arg15[%c0_62, %c0_63], %201 {strides = array<i32>} : memref<16x32xf32, #tpu.memory_space<vmem>>, vector<16x32xf32>,
    %c1_i32 = arith.constant 1 : i32
    %203 = arith.cmpi eq, %arg1, %c1_i32 : i32
    %204 = arith.extui %203 : i1 to i32
    %c0_i32_64 = arith.constant 0 : i32
    %205 = arith.cmpi ne, %204, %c0_i32_64 : i32
    scf.if %205 {
      %206 = vector.shape_cast %201 : vector<16x32xf32> to vector<2x8x32xf32>
      %c0_65 = arith.constant 0 : index
      %c0_66 = arith.constant 0 : index
      %c0_67 = arith.constant 0 : index
      %207 = vector.load %arg14[%c0_65, %c0_66, %c0_67] : memref<2x8x32xf32, #tpu.memory_space<vmem>>, vector<2x8x32xf32>
      tpu.vector_store %arg14[%c0_65, %c0_66, %c0_67], %206 {strides = array<i32>} : memref<2x8x32xf32, #tpu.memory_space<vmem>>, vector<2x8x32xf32>,
    } else {
    }
    return
  }
  func.func @transform_0(%arg0: i32, %arg1: i32) -> (i32, i32, i32) {
    %c0_i32 = arith.constant 0 : i32
    %c0_i32_0 = arith.constant 0 : i32
    %c0_i32_1 = arith.constant 0 : i32
    return %arg0, %c0_i32, %c0_i32_0 : i32, i32, i32
  }
  func.func @transform_1(%arg0: i32, %arg1: i32) -> (i32, i32, i32) {
    %c0_i32 = arith.constant 0 : i32
    %c0_i32_0 = arith.constant 0 : i32
    %c0_i32_1 = arith.constant 0 : i32
    return %arg1, %c0_i32, %c0_i32_0 : i32, i32, i32
  }
  func.func @transform_2(%arg0: i32, %arg1: i32) -> (i32, i32, i32) {
    %c0_i32 = arith.constant 0 : i32
    %c0_i32_0 = arith.constant 0 : i32
    %c0_i32_1 = arith.constant 0 : i32
    return %arg1, %c0_i32, %c0_i32_0 : i32, i32, i32
  }
  func.func @transform_3(%arg0: i32, %arg1: i32) -> (i32, i32, i32) {
    %c0_i32 = arith.constant 0 : i32
    %c0_i32_0 = arith.constant 0 : i32
    %c0_i32_1 = arith.constant 0 : i32
    return %arg1, %c0_i32, %c0_i32_0 : i32, i32, i32
  }
  func.func @transform_4(%arg0: i32, %arg1: i32) -> (i32, i32, i32) {
    %c0_i32 = arith.constant 0 : i32
    %c0_i32_0 = arith.constant 0 : i32
    %c0_i32_1 = arith.constant 0 : i32
    return %arg1, %c0_i32, %c0_i32_0 : i32, i32, i32
  }
  func.func @transform_5(%arg0: i32, %arg1: i32) -> (i32, i32, i32) {
    %c0_i32 = arith.constant 0 : i32
    %c0_i32_0 = arith.constant 0 : i32
    %c0_i32_1 = arith.constant 0 : i32
    return %arg1, %c0_i32, %c0_i32_0 : i32, i32, i32
  }
  func.func @transform_6(%arg0: i32, %arg1: i32) -> (i32, i32, i32) {
    %c0_i32 = arith.constant 0 : i32
    %c0_i32_0 = arith.constant 0 : i32
    %c0_i32_1 = arith.constant 0 : i32
    return %arg1, %c0_i32, %c0_i32_0 : i32, i32, i32
  }
  func.func @transform_7(%arg0: i32, %arg1: i32) -> (i32, i32, i32) {
    %c0_i32 = arith.constant 0 : i32
    %c0_i32_0 = arith.constant 0 : i32
    %c0_i32_1 = arith.constant 0 : i32
    return %arg1, %c0_i32, %c0_i32_0 : i32, i32, i32
  }
  func.func @transform_8(%arg0: i32, %arg1: i32) -> (i32, i32, i32) {
    %c0_i32 = arith.constant 0 : i32
    %c0_i32_0 = arith.constant 0 : i32
    %c0_i32_1 = arith.constant 0 : i32
    return %arg1, %c0_i32, %c0_i32_0 : i32, i32, i32
  }
  func.func @transform_9(%arg0: i32, %arg1: i32) -> (i32, i32, i32) {
    %c0_i32 = arith.constant 0 : i32
    %c0_i32_0 = arith.constant 0 : i32
    %c0_i32_1 = arith.constant 0 : i32
    return %arg1, %c0_i32, %c0_i32_0 : i32, i32, i32
  }
  func.func @transform_10(%arg0: i32, %arg1: i32) -> (i32, i32, i32) {
    %c0_i32 = arith.constant 0 : i32
    %c0_i32_0 = arith.constant 0 : i32
    %c0_i32_1 = arith.constant 0 : i32
    return %arg1, %c0_i32, %c0_i32_0 : i32, i32, i32
  }
  func.func @transform_11(%arg0: i32, %arg1: i32) -> (i32, i32, i32) {
    %c0_i32 = arith.constant 0 : i32
    %c0_i32_0 = arith.constant 0 : i32
    %c0_i32_1 = arith.constant 0 : i32
    return %arg1, %c0_i32, %c0_i32_0 : i32, i32, i32
  }
  func.func @transform_12(%arg0: i32, %arg1: i32) -> (i32, i32, i32) {
    %c0_i32 = arith.constant 0 : i32
    %c0_i32_0 = arith.constant 0 : i32
    %c0_i32_1 = arith.constant 0 : i32
    return %arg0, %c0_i32, %c0_i32_0 : i32, i32, i32
  }
}

</mosaic_0001>

<bundles_post_ra>
// kernel: tpu_custom_call.1
= control target key start
LH: loop header
LB: loop body
LE: loop exit
PB: predicated region body
PF: predicated region fallthrough
CT: control target
= control target key end

     0   :  { %s3600_s0 = inlined_call_operand.hbm [shape: f32[2,8,32], index: 0, kind: input, shape index: {}]   ;;  %s3601_s1 = inlined_call_operand.vmem [shape: f32[2,1,32], index: 1, kind: input, shape index: {}]   ;;  %s3602_s2 = inlined_call_operand.vmem [shape: f32[2,1,32], index: 2, kind: input, shape index: {}]   ;;  %s3603_s3 = inlined_call_operand.vmem [shape: bf16[2,32,96], index: 3, kind: input, shape index: {}]   ;;  %s3604_s4 = inlined_call_operand.vmem [shape: bf16[2,32,32], index: 4, kind: input, shape index: {}]   ;;  %s3605_s5 = inlined_call_operand.hbm [shape: f32[2,1,32], index: 5, kind: input, shape index: {}]   ;;  %s3606_s6 = inlined_call_operand.hbm [shape: f32[2,1,32], index: 6, kind: input, shape index: {}]   ;;  %s3607_s7 = inlined_call_operand.hbm [shape: f32[2,1,32], index: 7, kind: input, shape index: {}]   ;;  %s3608_s8 = inlined_call_operand.vmem [shape: bf16[2,32,64], index: 8, kind: input, shape index: {}]   ;;  %s3609_s9 = inlined_call_operand.hbm [shape: f32[2,1,64], index: 9, kind: input, shape index: {}]   ;;  %s3610_s10 = inlined_call_operand.vmem [shape: bf16[2,64,32], index: 10, kind: input, shape index: {}]   ;;  %s3611_s11 = inlined_call_operand.vmem [shape: f32[2,1,32], index: 11, kind: input, shape index: {}]   ;;  %s3612_s12 = inlined_call_operand.hbm [shape: f32[2,8,32], index: 12, kind: output, shape index: {}]  }
   0x1   :  { %3626 = sst [smem:[#allocation22_spill]] %s3604_s4 }
   0x2   :  { %3627 = sst [smem:[#allocation23_spill]] %s3605_s5 }
   0x3   :  { %3628 = sst [smem:[#allocation24_spill]] %s3607_s7 }
   0x4   :  { %3629 = sst [smem:[#allocation25_spill]] %s3608_s8 }
   0x5   :  { %3630 = sst [smem:[#allocation26_spill]] %s3610_s10 }
   0x6   :  { %3631 = sst [smem:[#allocation27_spill]] %s3611_s11 }
   0x7   :  { %3632 = sst [smem:[#allocation28_spill]] %s3612_s12 }
   0x8   :  { %17 = vsyncpa [#allocation4], 0 }
   0x9   :  { %18 = vsyncpa [#allocation7], 0 }
   0xa   :  { %20 = vsyncpa [#allocation7 + $0x1], 0 }
   0xb   :  { %21 = vsyncpa [#allocation10], 0 }
   0xc   :  { %23 = vsyncpa [#allocation10 + $0x1], 0 }
   0xd   :  { %24 = vsyncpa [#allocation5], 0  ;;  %s3002_s21 = smov 0   ;;  %s3004_s22 = smov 0  }
   0xe   :  { %s3006_s23 = smov 0   ;;  %s3008_s24 = smov 0  }
   0xf   :  { %s3010_s25 = smov 0   ;;  %s3012_s26 = smov 0  }
  0x10 LB: > { %3633 = sst [smem:[#allocation17_spill]] %s2904_s23  ;;  %s39_s27 = sadd.s32 1, %s2912_s25  ;;  %s2916_s26 = sphi %s3012_s26, %s30_s26   ;;  %s2912_s25 = sphi %s3010_s25, %s3672_s25   ;;  %s2908_s24 = sphi %s3008_s24, %s3668_s24   ;;  %s2904_s23 = sphi %s3006_s23, %s3667_s23   ;;  %s2900_s22 = sphi %s3004_s22, %s3671_s22   ;;  %s2896_s21 = sphi %s3002_s21, %s3670_s21  }
  0x11   : > { %3634 = sst [smem:[#allocation18_spill]] %s2912_s25  ;;  %s179_s28 = sadd.s32 1, %s2904_s23 }
  0x12   : > { %3635 = sst [smem:[#allocation19_spill]] %s2916_s26  ;;  %p40_p0 = scmp.ge.s32.totalorder %s39_s27, 2 }
  0x13   : > { %p186_p1 = scmp.ne.s32.totalorder %s2904_s23, %s2900_s22  ;;  %p187_p2 = scmp.eq.s32.totalorder %s2916_s26, 0 }
  0x14   : > { %s3674_s27 = smov (%p40_p0, %s39_s27), 0  ;;  %p2544_p4 = scmp.lt.s32.totalorder %s2916_s26, 2 }
  0x15   : > { %3636 = sst [smem:[#allocation20_spill]] %s3674_s27  ;;  %p188_p3 = por %p187_p2, %p186_p1 }
  0x16   : > { %s176_s29 = ssub.s32 %s2912_s25, %s3674_s27  ;;  %s3616_s30 = sand.u32 1, %s2916_s26  }
  0x17   : > { %p177_p5 = scmp.eq.s32.totalorder %s176_s29, 0  ;;  %s3044_s13 = sand.u32 1, %s2904_s23  }
  0x18   : > { %s3047_s14 = sshll.u32 %s2912_s25, 4  ;;  %s3638_s5 = sld [smem:[#allocation23_spill]] }
  0x19   : > { %s3050_s15 = scalar_select %p177_p5, %s2904_s23, %s179_s28  }
  0x1a   : > { %s445_s19 = scalar_lea.vmem [#allocation6], %s3044_s13  ;;  %p3059_p6 = pnand %p2544_p4, %p188_p3 }
  0x1b   : > { %3637 = sst [smem:[#allocation21_spill]] %s3050_s15  ;;  %s452_s20 = sshll.u32 %s445_s19, 4  ;;  %s3063_s20 = int_to_ptr.vmem [resolvable:$true] %s452_s20 }
  0x1c   : > { %s3639_s29 = scalar_select %p3059_p6, 1, 0 }
  0x1d   : > { %s3067_s28 = scalar_lea.sflag [#allocation7], %s3616_s30  ;;  %p3073_p8 = pneg %p3059_p6 }
  0x1e   : > { %s3056_s18 = scalar_lea.hbm %s3638_s5, %s3047_s14  ;;  %s2685_s25 = scalar_lea.hbm %s3638_s5, 32 }
  0x1f   : > { %s2680_s27 = scalar_lea.hbm %s3056_s18, 16  ;;  %p2686_p11 = scmp.lt.u32.totalorder %s3056_s18, %s3638_s5 }
  0x20   : > { %p2681_p7 = scmp.ne.s32.totalorder %s3056_s18, %s2680_s27  ;;  %p2687_p12 = scmp.lt.u32.totalorder %s2685_s25, %s2680_s27 }
  0x21   : > { %s3640_s16 = scalar_select %p3073_p8, 1, 0 }
  0x22   : > { %p2683_p9 = pnand %p3073_p8, %p2681_p7  ;;  %p2688_p13 = por %p2687_p12, %p2686_p11 }
  0x23   : > { %p2689_p0 = scmp.lt.u32.totalorder %s2680_s27, %s3056_s18 }
  0x24   : > { %p2684_p10 = pneg %p2683_p9 }
  0x25   : > { %p2690_p1 = por %p2689_p0, %p2688_p13 }
  0x27   : > { %p2691_p2 = pnand %p2690_p1, %p2684_p10 }
  0x29   : > { %2694 = shalt.err (!%p2691_p2)
}
  0x2a   : > { %s2695_s30 = scalar_lea.vmem %s3063_s20, 16  ;;  %s2918_s17 = smov [#allocation6]  }
  0x2b   : > { %p2696_p3 = scmp.ne.s32.totalorder %s3063_s20, %s2695_s30  ;;  %s2700_s19 = sshll.u32 %s2918_s17, 4  ;;  %s2701_s19 = int_to_ptr.vmem [resolvable:$false] %s2700_s19 }
  0x2c   : > { %s2702_s23 = scalar_lea.vmem %s2701_s19, 32  ;;  %p2703_p7 = scmp.lt.s32.totalorder %s3063_s20, %s2701_s19 }
  0x2d   : > { %p2698_p4 = pnand %p2696_p3, %p3073_p8  ;;  %p2704_p9 = scmp.lt.s32.totalorder %s2702_s23, %s2695_s30 }
  0x2f   : > { %p2699_p5 = pneg %p2698_p4  ;;  %p2705_p11 = por %p2704_p9, %p2703_p7 }
  0x31   : > { %p2706_p12 = pnand %p2705_p11, %p2699_p5 }
  0x33   : > { %2709 = shalt.err (!%p2706_p12)
}
  0x34   : > { %2533 = dma.hbm_to_vmem [thread:$0]  (!%p3059_p6), %s3056_s18, 16, %s3063_s20, %s3067_s28  }
  0x35   : > { %s3641_s7 = sld [smem:[#allocation24_spill]]  ;;  %s479_s30 = scalar_lea.vmem [#allocation9], %s3044_s13 }
  0x36   : > { %s486_s17 = sshll.u32 %s479_s30, 4  ;;  %s3642_s19 = sand.u32 1, %s2916_s26   ;;  %s487_s17 = int_to_ptr.vmem [resolvable:$true] %s486_s17 }
  0x37   : > { %s3106_s23 = scalar_lea.sflag [#allocation10], %s3642_s19 }
  0x3b   : > { %s3101_s15 = scalar_lea.hbm %s3641_s7, %s3047_s14  ;;  %s2715_s25 = scalar_lea.hbm %s3641_s7, 32 }
  0x3c   : > { %s2710_s5 = scalar_lea.hbm %s3101_s15, 16  ;;  %p2716_p1 = scmp.lt.u32.totalorder %s3101_s15, %s3641_s7 }
  0x3d   : > { %p2711_p10 = scmp.ne.s32.totalorder %s3101_s15, %s2710_s5  ;;  %p2717_p2 = scmp.lt.u32.totalorder %s2715_s25, %s2710_s5 }
  0x3e   : > { %p2719_p4 = scmp.lt.u32.totalorder %s2710_s5, %s3101_s15 }
  0x3f   : > { %p2713_p13 = pnand %p2711_p10, %p3073_p8  ;;  %p2718_p3 = por %p2717_p2, %p2716_p1 }
  0x41   : > { %p2714_p0 = pneg %p2713_p13  ;;  %p2720_p5 = por %p2719_p4, %p2718_p3 }
  0x43   : > { %p2721_p7 = pnand %p2720_p5, %p2714_p0 }
  0x45   : > { %2724 = shalt.err (!%p2721_p7)
}
  0x46   : > { %s2725_s30 = scalar_lea.vmem %s487_s17, 16  ;;  %s2919_s19 = smov [#allocation9]  }
  0x47   : > { %p2726_p9 = scmp.ne.s32.totalorder %s487_s17, %s2725_s30  ;;  %s2730_s11 = sshll.u32 %s2919_s19, 4  ;;  %s2731_s11 = int_to_ptr.vmem [resolvable:$false] %s2730_s11 }
  0x48   : > { %s2732_s18 = scalar_lea.vmem %s2731_s11, 32  ;;  %p2733_p10 = scmp.lt.s32.totalorder %s487_s17, %s2731_s11 }
  0x49   : > { %p2728_p11 = pnand %p2726_p9, %p3073_p8  ;;  %p2734_p13 = scmp.lt.s32.totalorder %s2732_s18, %s2725_s30 }
  0x4b   : > { %p2729_p12 = pneg %p2728_p11  ;;  %p2735_p6 = por %p2734_p13, %p2733_p10 }
  0x4d   : > { %p2736_p1 = pnand %p2735_p6, %p2729_p12 }
  0x4f   : > { %2739 = shalt.err (!%p2736_p1)
}
  0x50   : > { %p3643_p2 = scmp.ne.s32.totalorder %s3639_s29, 0  ;;  %s3127_s5 = sadd.s32 4294967295, %s2916_s26  }
  0x51   : > { %p192_p0 = scmp.ne.s32.totalorder %s2900_s22, %s2896_s21  ;;  %p3621_p6 = scmp.eq.s32.totalorder %s3127_s5, 0 }
  0x52   : > { %2539 = dma.hbm_to_vmem [thread:$0]  (!%p3643_p2), %s3101_s15, 16, %s487_s17, %s3106_s23  }
  0x53   : > { %p2268_p3 = scmp.ge.s32.totalorder %s2916_s26, 1  ;;  %p385_p4 = scmp.lt.s32.totalorder %s2916_s26, 3 }
  0x54   : > { %p3136_p5 = por %p3621_p6, %p192_p0  ;;  %s2920_s15 = smov [#allocation3]  }
  0x55   : > { %p3140_p7 = pnand %p2268_p3, %p385_p4  ;;  %s400_s17 = sshll.u32 %s2920_s15, 4  ;;  %s401_s17 = int_to_ptr.vmem [resolvable:$true] %s400_s17 }
  0x56   : > { %s3644_s11 = scalar_select %p3136_p5, 1, 0 }
  0x57   : > { %s3645_s12 = scalar_select %p3140_p7, 1, 0 }
  0x58   : > { %p2526_p9 = pneg %p3140_p7  ;;  %s3156_s27 = scalar_lea.hbm %s3606_s6, %s3047_s14 }
  0x59   : > { %s462_s30 = scalar_lea.vmem [#allocation8], %s3044_s13  ;;  %s2740_s7 = scalar_lea.hbm %s3600_s0, 256 }
  0x5a   : > { %p3148_p11 = pnand %p2526_p9, %p3621_p6  ;;  %s469_s19 = sshll.u32 %s462_s30, 4  ;;  %s3159_s19 = int_to_ptr.vmem [resolvable:$true] %s469_s19 }
  0x5b   : > { %p2741_p12 = scmp.ne.s32.totalorder %s3600_s0, %s2740_s7  ;;  %p2747_p0 = scmp.lt.u32.totalorder %s2740_s7, %s3600_s0 }
  0x5c   : > { %p2742_p10 = pneg %p3148_p11 }
  0x5e   : > { %p2743_p13 = pnand %p2742_p10, %p2741_p12 }
  0x60   : > { %p2744_p1 = pneg %p2743_p13 }
  0x62   : > { %p2749_p3 = pnand %p2747_p0, %p2744_p1 }
  0x64   : > { %2752 = shalt.err (!%p2749_p3)
}
  0x65   : > { %s2753_s30 = scalar_lea.vmem %s401_s17, 256  ;;  %p2761_p5 = scmp.lt.s32.totalorder %s401_s17, %s401_s17 }
  0x66   : > { %p2754_p4 = scmp.ne.s32.totalorder %s401_s17, %s2753_s30  ;;  %p2762_p7 = scmp.lt.s32.totalorder %s2753_s30, %s2753_s30 }
  0x68   : > { %p2756_p9 = pnand %p2754_p4, %p2742_p10  ;;  %p2763_p2 = por %p2762_p7, %p2761_p5 }
  0x6a   : > { %p2757_p6 = pneg %p2756_p9 }
  0x6c   : > { %p2764_p8 = pnand %p2763_p2, %p2757_p6 }
  0x6e   : > { %2767 = shalt.err (!%p2764_p8)
}
  0x6f   : > { %s2921_s10 = smov 128   ;;  %s2922_s26 = smov 8  }
  0x70   : > { %2529 = dma.hbm_to_vmem [thread:$0]  (!%p3148_p11), %s3600_s0, 256, %s401_s17, [#allocation4], %s2921_s10, %s2921_s10, %s2922_s26  }
  0x71   : > { %s2768_s15 = scalar_lea.hbm %s3156_s27, 16  ;;  %p3647_p10 = scmp.ne.s32.totalorder %s3640_s16, 0 }
  0x72   : > { %p2769_p12 = scmp.ne.s32.totalorder %s3156_s27, %s2768_s15  ;;  %s2773_s30 = scalar_lea.hbm %s3606_s6, 32 }
  0x73   : > { %p2774_p8 = scmp.lt.u32.totalorder %s3156_s27, %s3606_s6  ;;  %p2775_p2 = scmp.lt.u32.totalorder %s2773_s30, %s2768_s15 }
  0x74   : > { %p2771_p13 = pnand %p2769_p12, %p3647_p10  ;;  %p2777_p7 = scmp.lt.u32.totalorder %s2768_s15, %s3156_s27 }
  0x75   : > { %p2776_p6 = por %p2775_p2, %p2774_p8 }
  0x76   : > { %p2772_p5 = pneg %p2771_p13 }
  0x77   : > { %p2778_p1 = por %p2777_p7, %p2776_p6 }
  0x79   : > { %p2779_p0 = pnand %p2778_p1, %p2772_p5 }
  0x7b   : > { %2782 = shalt.err (!%p2779_p0)
}
  0x7c   : > { %s2783_s17 = scalar_lea.vmem %s3159_s19, 16  ;;  %s2923_s21 = smov [#allocation8]  }
  0x7d   : > { %p2784_p11 = scmp.ne.s32.totalorder %s3159_s19, %s2783_s17  ;;  %s2788_s10 = sshll.u32 %s2923_s21, 4  ;;  %s2789_s10 = int_to_ptr.vmem [resolvable:$false] %s2788_s10 }
  0x7e   : > { %s2790_s4 = scalar_lea.vmem %s2789_s10, 32  ;;  %p2791_p9 = scmp.lt.s32.totalorder %s3159_s19, %s2789_s10 }
  0x7f   : > { %p2786_p3 = pnand %p2784_p11, %p3647_p10  ;;  %p2792_p12 = scmp.lt.s32.totalorder %s2790_s4, %s2783_s17 }
  0x81   : > { %p2787_p4 = pneg %p2786_p3  ;;  %p2793_p13 = por %p2792_p12, %p2791_p9 }
  0x83   : > { %p2794_p8 = pnand %p2793_p13, %p2787_p4 }
  0x85   : > { %2797 = shalt.err (!%p2794_p8)
}
  0x86   : > { %p3648_p5 = scmp.ne.s32.totalorder %s3639_s29, 0  ;;  %s3203_s7 = scalar_lea.hbm %s3609_s9, %s3047_s14 }
  0x87   : > { %s504_s18 = scalar_lea.vmem [#allocation11], %s3044_s13  ;;  %s2798_s20 = scalar_lea.hbm %s3203_s7, 16 }
  0x88   : > { %2536 = dma.hbm_to_vmem [thread:$0]  (!%p3648_p5), %s3156_s27, 16, %s3159_s19, %s3067_s28  }
  0x89   : > { %s511_s15 = sshll.u32 %s504_s18, 4  ;;  %p2799_p2 = scmp.ne.s32.totalorder %s3203_s7, %s2798_s20  ;;  %s512_s15 = int_to_ptr.vmem [resolvable:$true] %s511_s15 }
  0x8a   : > { %s2803_s28 = scalar_lea.hbm %s3609_s9, 32  ;;  %p2804_p1 = scmp.lt.u32.totalorder %s3203_s7, %s3609_s9 }
  0x8b   : > { %p2801_p6 = pnand %p2799_p2, %p3647_p10  ;;  %p2805_p0 = scmp.lt.u32.totalorder %s2803_s28, %s2798_s20 }
  0x8c   : > { %p2807_p3 = scmp.lt.u32.totalorder %s2798_s20, %s3203_s7 }
  0x8d   : > { %p2802_p7 = pneg %p2801_p6  ;;  %p2806_p11 = por %p2805_p0, %p2804_p1 }
  0x8f   : > { %p2808_p4 = por %p2807_p3, %p2806_p11 }
  0x91   : > { %p2809_p9 = pnand %p2808_p4, %p2802_p7 }
  0x93   : > { %2812 = shalt.err (!%p2809_p9)
}
  0x94   : > { %s2813_s13 = scalar_lea.vmem %s512_s15, 16  ;;  %s2924_s14 = smov [#allocation11]  }
  0x95   : > { %p2814_p12 = scmp.ne.s32.totalorder %s512_s15, %s2813_s13  ;;  %s2818_s17 = sshll.u32 %s2924_s14, 4  ;;  %s2819_s17 = int_to_ptr.vmem [resolvable:$false] %s2818_s17 }
  0x96   : > { %s2820_s21 = scalar_lea.vmem %s2819_s17, 32  ;;  %p2821_p2 = scmp.lt.s32.totalorder %s512_s15, %s2819_s17 }
  0x97   : > { %p2816_p13 = pnand %p2814_p12, %p3647_p10  ;;  %p2822_p6 = scmp.lt.s32.totalorder %s2820_s21, %s2813_s13 }
  0x99   : > { %p2817_p8 = pneg %p2816_p13  ;;  %p2823_p5 = por %p2822_p6, %p2821_p2 }
  0x9b   : > { %p2824_p0 = pnand %p2823_p5, %p2817_p8 }
  0x9d   : > { %2827 = shalt.err (!%p2824_p0)
}
  0x9e   : > { %p3649_p1 = scmp.ne.s32.totalorder %s3639_s29, 0  ;;  %p3650_p7 = scmp.ne.s32.totalorder %s3645_s12, 0 }
  0x9f   : > { %p3651_p10 = scmp.eq.s32.totalorder (!%p3650_p7), %s3127_s5, 0 }
  0xa0   : > { %2542 = dma.hbm_to_vmem [thread:$0]  (!%p3649_p1), %s3203_s7, 16, %s512_s15, %s3106_s23  }
  0xa1   : > { %534 = sbr.rel (%p3650_p7) target bundleno = 3447 (0xd77), region = 68 }
  0xa8   : > { %2879 = dma.done.wait (%p3651_p10), [#allocation4], 256   ;;  %p3652_p11 = pmov %p3651_p10 }
  0xa9   : > { %s540_s16 = sand.u32 1, %s3127_s5   ;;  %s3232_s10 = sand.u32 1, %s2900_s22  }
  0xaa   : > { %2881 = vsyncadd (%p3652_p11), [#allocation4], 4294967040  ;;  %s541_s29 = scalar_lea.sflag [#allocation7], %s540_s16  ;;  %p3653_p5 = scmp.ne.s32.totalorder %s3644_s11, 0 }
  0xac   : > { %2883 = dma.done.wait (%p3653_p5), %s541_s29, 32  }
  0xad   : > { %2885 = vsyncadd (%p3653_p5), %s541_s29, 4294967264  ;;  %s557_s12 = scalar_lea.sflag [#allocation10], %s540_s16 }
  0xae   : > { %2887 = dma.done.wait (%p3653_p5), %s557_s12, 32  }
  0xaf   : > { %2889 = vsyncadd (%p3653_p5), %s557_s12, 4294967264  ;;  %p644_p3 = scmp.lt.s32.totalorder %s2908_s24, 1  ;;  %s3654_s21 = sld [smem:[#allocation22_spill]] }
  0xb0   : > { %s3655_s7 = sld [smem:[#allocation25_spill]]  ;;  %s3656_s25 = sld [smem:[#allocation26_spill]] }
  0xb1   : > { %s3247_s26 = scalar_select %p644_p3, %s2908_s24, 1 }
  0xb2   : > { %s3657_s27 = sld [smem:[#allocation27_spill]]  ;;  %s567_s15 = scalar_lea.vmem [#allocation11], %s3232_s10 }
  0xb3   : > { %s2328_s30 = sshll.u32 %s3247_s26, 4  ;;  %s2331_s28 = sshll.u32 %s3247_s26, 5 }
  0xb4   : > { %s3262_s13 = scalar_lea.vmem %s3603_s3, %s2328_s30  ;;  %p2285_p4 = scmp.ne.s32.totalorder %s2908_s24, 0 }
  0xb5   : > { %s3267_s16 = scalar_lea.vmem %s3654_s21, %s2328_s30  ;;  %v679_v0 = vld [vmem:[#allocation3] sm:$0xff] (!%p2285_p4)  ;;  %vm681_vm0 = vcmask (!%p2285_p4), 261120   ;;  %v680_v1 = vld [vmem:[#allocation3 + $0x8] sm:$0xff] (!%p2285_p4) }
  0xb6   : > { %s3272_s18 = scalar_lea.vmem %s3655_s7, %s2328_s30  ;;  %s3277_s23 = scalar_lea.vmem %s3656_s25, %s2331_s28  ;;  %682 = vst.msk [vmem:[#allocation2] sm:$0xff] (!%p2285_p4), %vm681_vm0, %v679_v0  ;;  %683 = vst.msk [vmem:[#allocation2 + $0x8] sm:$0xff] (!%p2285_p4), %vm681_vm0, %v680_v1 }
  0xb7   : > { %678 = sbr.rel (%p2285_p4) target bundleno = 190 (0xbe), region = 92 }
  0xb8   : > { %s672_s19 = scalar_lea.vmem %s3657_s27, %s3247_s26 }
  0xbe PF: > { %v3285_v2 = vld [vmem:[#allocation2] sm:$0xff]  ;;  %vm688_vm1 = vcmask 261120   ;;  %v3287_v3 = vld [vmem:[#allocation2 + $0x8] sm:$0xff]  ;;  %v2925_v17 = vmov 0.0   ;;  %vm2926_vm2 = vmmov 0   ;;  %s3658_s11 = scalar_lea.vmem %s3601_s1, %s3247_s26  ;;  %s2927_s14 = smov 112  }
  0xbf   : > { %v689_v4 = vsel %vm688_vm1, %v3285_v2, 0.0  ;;  %v692_v5 = vsel %vm688_vm1, %v3287_v3, 0.0  ;;  %v2626_v16 = vld [vmem:[%s3262_s13] sm:$0xff]   ;;  %2378 = vmatprep.subr.bf16.mxu0 %v2925_v17  ;;  %2386 = vmatprep.subr.bf16.mxu1 %v2925_v17  ;;  %v2627_v18 = vld [vmem:[%s3262_s13 + $0x8] sm:$0xff]   ;;  %s3659_s13 = scalar_lea.vmem %s3602_s2, %s3247_s26  ;;  %s2928_s17 = smov 120   ;;  %vm826_vm3 = vcmask 64512  }
  0xc0   : > { %690 = vadd.xlane.f32.xlu0 %v689_v4  ;;  %2379 = vmatpush3.bf16.msra.mxu0 %v2626_v16  ;;  %v2286_v27 = vld [vmem:[%s3658_s11] ss:$0 sm:$0xff]  ;;  %s2929_s21 = smov 104   ;;  %s2930_s29 = smov 96   ;;  %vm1077_vm4 = vcmask 1043456   ;;  %vm1278_vm5 = vcmask 130048  }
  0xc1   : > { %2382 = vmatprep.mubr.msk.bf16.mxu0 %vm2926_vm2, %v2925_v17  ;;  %2380 = vmatprep.subr.bf16.mxu0 %v2925_v17  ;;  %v2287_v31 = vld [vmem:[%s3659_s13] ss:$0 sm:$0xff]  ;;  %s2931_s12 = smov 64   ;;  %s2932_s7 = smov 8   ;;  %vm1280_vm6 = vcmask 195584   ;;  %vm1999_vm7 = vcmask 523264  }
  0xc2   : > { %2388 = vmatprep.mubr.msk.bf16.mxu1 %vm2926_vm2, %v2925_v17  ;;  %s2933_s20 = smov 16   ;;  %s2934_s25 = smov 24  }
  0xc3   : > { %s3661_s27 = scalar_lea.vmem [#allocation8], %s3232_s10  ;;  %p2323_p9 = scmp.ne.s32.totalorder %s2908_s24, 1 }
  0xc4   : > { %693 = vadd.xlane.f32.xlu0 %v692_v5  ;;  %2381 = vmatpush3.bf16.msra.mxu0 %v2627_v18 }
  0xc5   : > { %2392 = vmatprep.subr.bf16.mxu0 %v2925_v17 }
 0x14d   : > { %v691_v6 = vpop.xlane.xlu0 %690 }
 0x14e   : > { %v696_v7 = vmul.f32 0.03125, %v691_v6 }
 0x150   : > { %v698_v8 = vsub.f32 %v3285_v2, %v696_v7 }
 0x151   : > { %v694_v9 = vpop.xlane.xlu0 %693 }
 0x152   : > { %v697_v10 = vmul.f32 0.03125, %v694_v9  ;;  %v700_v11 = vmul.f32 %v698_v8, %v698_v8 }
 0x154   : > { %v699_v12 = vsub.f32 %v3287_v3, %v697_v10  ;;  %v702_v13 = vsel %vm688_vm1, %v700_v11, 0.0 }
 0x155   : > { %703 = vadd.xlane.f32.xlu1 %v702_v13 }
 0x156   : > { %v701_v14 = vmul.f32 %v699_v12, %v699_v12 }
 0x158   : > { %v705_v15 = vsel %vm688_vm1, %v701_v14, 0.0 }
 0x159   : > { %706 = vadd.xlane.f32.xlu1 %v705_v15 }
 0x1e2   : > { %v704_v19 = vpop.xlane.xlu1 %703 }
 0x1e3   : > { %v708_v20 = vmul.f32 0.03125, %v704_v19 }
 0x1e5   : > { %v710_v21 = vadd.f32 1e-05, %v708_v20 }
 0x1e6   : > { %v707_v22 = vpop.xlane.xlu1 %706 }
 0x1e7   : > { %2636 = vrsqrt.f32 %v710_v21  ;;  %v709_v23 = vmul.f32 0.03125, %v707_v22 }
 0x1e9   : > { %v711_v24 = vadd.f32 1e-05, %v709_v23 }
 0x1eb   : > { %2638 = vrsqrt.f32 %v711_v24 }
 0x1f1   : > { %v2637_v25 = vpop.eup %2636 }
 0x1f2   : > { %v714_v26 = vmul.f32 %v2637_v25, %v698_v8 }
 0x1f4   : > { %v722_v30 = vmul.f32 %v2286_v27, %v714_v26 }
 0x1f5   : > { %v2639_v28 = vpop.eup %2638 }
 0x1f6   : > { %v715_v29 = vmul.f32 %v2639_v28, %v699_v12  ;;  %v730_v33 = vadd.f32 %v2287_v31, %v722_v30 }
 0x1f8   : > { %v723_v32 = vmul.f32 %v2286_v27, %v715_v29 }
 0x1fa   : > { %v731_v34 = vadd.f32 %v2287_v31, %v723_v32 }
 0x1fc   : > { %v732_v35 = vpack.c.bf16 %v731_v34, %v730_v33 }
 0x1fe   : > { %2383 = vmatmul.mubr.msk.bf16.vlgmr.msra.gmra.mrb[0].mxu0 %vm688_vm1, %v732_v35 }
 0x1ff   : > { %2394 = vmatprep.mubr.msk.bf16.mxu0 %vm2926_vm2, %v2925_v17 }
 0x2d1   : > { %v786_v36 = vpop.f32.mrb[0].mxu0 }
 0x2d2   : > { %813 = vrot.lane.b32.xlu1 %v786_v36, %s2927_s14  ;;  %810 = vrot.lane.b32.xlu0 %v786_v36, %s2928_s17  ;;  %v2384_v37 = vpop.f32.mrb[1].mxu0  ;;  %v3325_v40 = vpack.c.bf16 %v786_v36, %v786_v36  ;;  %v793_v41 = vmul.f32 0.35355338, %v786_v36 }
 0x2d3   : > { %v3322_v38 = vpop.f32.mrb[2].mxu0 }
 0x2d4   : > { %v2385_v39 = vpop.f32.mrb[3].mxu0  ;;  %v805_v50 = vpack.c.bf16 %v793_v41, %v793_v41  ;;  %v3385_v27 = vpack.c.bf16 %v3322_v38, %v3322_v38  ;;  %v3390_v28 = vmul.f32 0.35355338, %v3322_v38 }
 0x2d6   : > { %816 = vrot.lane.b32.xlu1 %v786_v36, %s2929_s21 }
 0x2da   : > { %824 = vrot.lane.b32.xlu1 %v3325_v40, %s2930_s29 }
 0x2de   : > { %796 = vrot.lane.b32.xlu1 %v793_v41, %s2928_s17 }
 0x344   : > { %v814_v42 = vpop.permute.xlu1 %813  ;;  %v811_v43 = vpop.permute.xlu0 %810 }
 0x345   : > { %v3330_v44 = vpack.c.bf16 %v811_v43, %v811_v43  ;;  %v3334_v46 = vpack.c.bf16 %v814_v42, %v814_v42 }
 0x347   : > { %874 = vrot.lane.b32.xlu0 %v3330_v44, %s2930_s29 }
 0x348   : > { %v817_v45 = vpop.permute.xlu1 %816 }
 0x349   : > { %v3336_v47 = vpack.c.bf16 %v817_v45, %v817_v45 }
 0x34b   : > { %923 = vrot.lane.b32.xlu0 %v3334_v46, %s2930_s29  ;;  %972 = vrot.lane.b32.xlu1 %v3336_v47, %s2930_s29 }
 0x34c   : > { %v825_v48 = vpop.permute.xlu1 %824 }
 0x34d   : > { %v831_v49 = vsel %vm826_vm3, %v825_v48, 0 }
 0x34e   : > { %2387 = vmatpush3.bf16.xpose.msra.mxu1 %v831_v49 }
 0x34f   : > { %799 = vrot.lane.b32.xlu0 %v793_v41, %s2927_s14  ;;  %802 = vrot.lane.b32.xlu1 %v793_v41, %s2929_s21 }
 0x350   : > { %2398 = vmatprep.subr.bf16.mxu1 %v2925_v17  ;;  %v797_v53 = vpop.permute.xlu1 %796 }
 0x351   : > { %v806_v57 = vpack.c.bf16 %v797_v53, %v797_v53 }
 0x355   : > { %2389 = vmatmul.mubr.msk.bf16.vlgmr.msra.gmra.mrb[0].mxu1 %vm826_vm3, %v805_v50 }
 0x356   : > { %2400 = vmatprep.mubr.msk.bf16.mxu1 %vm2926_vm2, %v2925_v17 }
 0x3b9   : > { %v875_v51 = vpop.permute.xlu0 %874 }
 0x3ba   : > { %v880_v52 = vsel %vm826_vm3, %v875_v51, 0 }
 0x3bb   : > { %2393 = vmatpush3.bf16.xpose.msra.mxu0 %v880_v52 }
 0x3bc   : > { %2404 = vmatprep.subr.bf16.mxu0 %v2925_v17 }
 0x3bd   : > { %v924_v54 = vpop.permute.xlu0 %923  ;;  %v973_v56 = vpop.permute.xlu1 %972 }
 0x3be   : > { %v929_v55 = vsel %vm826_vm3, %v924_v54, 0  ;;  %v978_v59 = vsel %vm826_vm3, %v973_v56, 0 }
 0x3bf   : > { %2399 = vmatpush3.bf16.xpose.msra.mxu1 %v929_v55 }
 0x3c0   : > { %2410 = vmatprep.subr.bf16.mxu1 %v2925_v17 }
 0x3c1   : > { %v800_v58 = vpop.permute.xlu0 %799  ;;  %v803_v61 = vpop.permute.xlu1 %802 }
 0x3c2   : > { %2395 = vmatmul.mubr.msk.bf16.vlgmr.msra.gmra.mrb[4].mxu0 %vm826_vm3, %v806_v57  ;;  %v807_v60 = vpack.c.bf16 %v800_v58, %v800_v58  ;;  %v808_v62 = vpack.c.bf16 %v803_v61, %v803_v61 }
 0x3c3   : > { %2405 = vmatpush3.bf16.xpose.msra.mxu0 %v978_v59  ;;  %2406 = vmatprep.mubr.msk.bf16.mxu0 %vm2926_vm2, %v2925_v17 }
 0x3c4   : > { %2416 = vmatprep.subr.bf16.mxu0 %v2925_v17 }
 0x3c6   : > { %2401 = vmatmul.mubr.msk.bf16.vlgmr.msra.gmra.mrb[4].mxu1 %vm826_vm3, %v807_v60 }
 0x3c7   : > { %2412 = vmatprep.mubr.msk.bf16.mxu1 %vm2926_vm2, %v2925_v17 }
 0x3ca   : > { %2407 = vmatmul.mubr.msk.bf16.vlgmr.msra.gmra.mrb[8].mxu0 %vm826_vm3, %v808_v62 }
 0x3cb   : > { %2418 = vmatprep.mubr.msk.bf16.mxu0 %vm2926_vm2, %v2925_v17 }
 0x428   : > { %v867_v63 = vpop.f32.mrb[0].mxu1 }
 0x429   : > { %v2390_v0 = vpop.f32.mrb[1].mxu1  ;;  %v1020_v1 = vsel %vm826_vm3, %v867_v63, -inf }
 0x42a   : > { %1021 = vmax.xlane.f32.xlu0 %v1020_v1  ;;  %v870_v4 = vpop.f32.mrb[2].mxu1 }
 0x42b   : > { %v2391_v5 = vpop.f32.mrb[3].mxu1 }
 0x495   : > { %v916_v6 = vpop.f32.mrb[4].mxu0 }
 0x496   : > { %v2396_v7 = vpop.f32.mrb[5].mxu0  ;;  %v1023_v8 = vsel %vm826_vm3, %v916_v6, -inf }
 0x497   : > { %1024 = vmax.xlane.f32.xlu1 %v1023_v8  ;;  %v919_v9 = vpop.f32.mrb[6].mxu0 }
 0x498   : > { %v2397_v10 = vpop.f32.mrb[7].mxu0 }
 0x499   : > { %v965_v11 = vpop.f32.mrb[4].mxu1 }
 0x49a   : > { %v2402_v12 = vpop.f32.mrb[5].mxu1  ;;  %v1026_v13 = vsel %vm826_vm3, %v965_v11, -inf }
 0x49b   : > { %1027 = vmax.xlane.f32.xlu0 %v1026_v13  ;;  %v968_v14 = vpop.f32.mrb[6].mxu1 }
 0x49c   : > { %v2403_v15 = vpop.f32.mrb[7].mxu1 }
 0x49d   : > { %v1014_v16 = vpop.f32.mrb[8].mxu0 }
 0x49e   : > { %v2408_v18 = vpop.f32.mrb[9].mxu0  ;;  %v1029_v19 = vsel %vm826_vm3, %v1014_v16, -inf }
 0x49f   : > { %1030 = vmax.xlane.f32.xlu0 %v1029_v19  ;;  %v1017_v20 = vpop.f32.mrb[10].mxu0  ;;  %v1292_v19 = vpack.c.bf16 %v3390_v28, %v3390_v28 }
 0x4a0   : > { %v2409_v21 = vpop.f32.mrb[11].mxu0 }
 0x4a8   : > { %1300 = vrot.lane.b32.xlu1 %v3322_v38, %s2927_s14 }
 0x4ac   : > { %1303 = vrot.lane.b32.xlu1 %v3322_v38, %s2929_s21 }
 0x4b0   : > { %1072 = vrot.lane.b32.xlu1 %v3325_v40, %s2931_s12 }
 0x4b4   : > { %1169 = vrot.lane.b32.xlu1 %v3334_v46, %s2931_s12 }
 0x4b5   : > { %1297 = vrot.lane.b32.xlu0 %v3322_v38, %s2928_s17 }
 0x4b7   : > { %v1022_v22 = vpop.xlane.xlu0 %1021 }
 0x4b8   : > { %v1032_v23 = vsub.f32 %v867_v63, %v1022_v22 }
 0x4b9   : > { %1121 = vrot.lane.b32.xlu0 %v3330_v44, %s2931_s12 }
 0x4ba   : > { %v1036_v24 = vmul.f32 1.442695, %v1032_v23 }
 0x4bc   : > { %2640 = vpow2.f32 %v1036_v24 }
 0x4c6   : > { %v2641_v25 = vpop.eup %2640 }
 0x4c7   : > { %v1044_v26 = vsel %vm826_vm3, %v2641_v25, 0.0 }
 0x4d8   : > { %1045 = vadd.xlane.f32.xlu1 %v1044_v26 }
 0x4e9   : > { %1217 = vrot.lane.b32.xlu1 %v3336_v47, %s2931_s12 }
 0x4ed   : > { %1311 = vrot.lane.b32.xlu1 %v3385_v27, %s2930_s29 }
 0x4f1   : > { %1283 = vrot.lane.b32.xlu1 %v3390_v28, %s2928_s17 }
 0x524   : > { %v1025_v29 = vpop.xlane.xlu1 %1024 }
 0x525   : > { %v1033_v30 = vsub.f32 %v916_v6, %v1025_v29 }
 0x527   : > { %v1038_v31 = vmul.f32 1.442695, %v1033_v30 }
 0x528   : > { %v1028_v32 = vpop.xlane.xlu0 %1027  ;;  %v1301_v33 = vpop.permute.xlu1 %1300 }
 0x529   : > { %2642 = vpow2.f32 %v1038_v31  ;;  %v1034_v34 = vsub.f32 %v965_v11, %v1028_v32  ;;  %v3411_v53 = vpack.c.bf16 %v1301_v33, %v1301_v33 }
 0x52b   : > { %v1040_v35 = vmul.f32 1.442695, %v1034_v34 }
 0x52c   : > { %v1304_v36 = vpop.permute.xlu1 %1303  ;;  %v1031_v37 = vpop.xlane.xlu0 %1030 }
 0x52d   : > { %2644 = vpow2.f32 %v1040_v35  ;;  %v3394_v39 = vpack.c.bf16 %v1304_v36, %v1304_v36  ;;  %v1035_v40 = vsub.f32 %v1014_v16, %v1031_v37 }
 0x52f   : > { %v1042_v38 = vmul.f32 1.442695, %v1035_v40  ;;  %1458 = vrot.lane.b32.xlu1 %v3394_v39, %s2930_s29 }
 0x530   : > { %v1073_v41 = vpop.permute.xlu1 %1072  ;;  %v1298_v42 = vpop.permute.xlu0 %1297 }
 0x531   : > { %2646 = vpow2.f32 %v1042_v38  ;;  %v1079_v43 = vsel %vm1077_vm4, %v1073_v41, 0  ;;  %v3407_v52 = vpack.c.bf16 %v1298_v42, %v1298_v42 }
 0x532   : > { %2411 = vmatpush3.bf16.msra.mxu1 %v1079_v43 }
 0x533   : > { %v2643_v44 = vpop.eup %2642  ;;  %1289 = vrot.lane.b32.xlu1 %v3390_v28, %s2929_s21  ;;  %2422 = vmatprep.subr.bf16.mxu1 %v2925_v17 }
 0x534   : > { %v1122_v45 = vpop.permute.xlu0 %1121  ;;  %v1047_v46 = vsel %vm826_vm3, %v2643_v44, 0.0  ;;  %v1170_v54 = vpop.permute.xlu1 %1169 }
 0x535   : > { %v1127_v47 = vsel %vm1077_vm4, %v1122_v45, 0  ;;  %1048 = vadd.xlane.f32.xlu0 %v1047_v46  ;;  %v1175_v59 = vsel %vm1077_vm4, %v1170_v54, 0 }
 0x536   : > { %2417 = vmatpush3.bf16.msra.mxu0 %v1127_v47 }
 0x537   : > { %v2645_v48 = vpop.eup %2644  ;;  %2428 = vmatprep.subr.bf16.mxu0 %v2925_v17 }
 0x538   : > { %v1050_v49 = vsel %vm826_vm3, %v2645_v48, 0.0 }
 0x539   : > { %1051 = vadd.xlane.f32.xlu0 %v1050_v49 }
 0x53b   : > { %v2647_v50 = vpop.eup %2646 }
 0x53c   : > { %v1053_v51 = vsel %vm826_vm3, %v2647_v50, 0.0 }
 0x53d   : > { %1054 = vadd.xlane.f32.xlu0 %v1053_v51 }
 0x553   : > { %1360 = vrot.lane.b32.xlu0 %v3407_v52, %s2930_s29 }
 0x557   : > { %1409 = vrot.lane.b32.xlu0 %v3411_v53, %s2930_s29 }
 0x55b   : > { %1286 = vrot.lane.b32.xlu0 %v3390_v28, %s2927_s14 }
 0x565   : > { %v1046_v55 = vpop.xlane.xlu1 %1045 }
 0x566   : > { %2648 = vrcp.f32 %v1046_v55 }
 0x569   : > { %v1218_v0 = vpop.permute.xlu1 %1217 }
 0x56a   : > { %v1223_v6 = vsel %vm1077_vm4, %v1218_v0, 0 }
 0x56d   : > { %v1312_v8 = vpop.permute.xlu1 %1311 }
 0x56e   : > { %v1317_v12 = vsel %vm826_vm3, %v1312_v8, 0 }
 0x570   : > { %v2649_v56 = vpop.eup %2648 }
 0x571   : > { %v1064_v57 = vmul.f32 %v2649_v56, %v2641_v25  ;;  %v1284_v18 = vpop.permute.xlu1 %1283 }
 0x572   : > { %v1293_v22 = vpack.c.bf16 %v1284_v18, %v1284_v18 }
 0x573   : > { %v1068_v58 = vpack.c.bf16 %v1064_v57, %v1064_v57 }
 0x575   : > { %2413 = vmatmul.mubr.msk.bf16.vlgmr.msra.gmra.mrb[8].mxu1 %vm826_vm3, %v1068_v58 }
 0x576   : > { %2423 = vmatpush3.bf16.msra.mxu1 %v1175_v59  ;;  %2424 = vmatprep.mubr.msk.bf16.mxu1 %vm2926_vm2, %v2925_v17 }
 0x577   : > { %2434 = vmatprep.subr.bf16.mxu1 %v2925_v17 }
 0x5a1   : > { %v1459_v21 = vpop.permute.xlu1 %1458 }
 0x5a2   : > { %v1464_v24 = vsel %vm826_vm3, %v1459_v21, 0 }
 0x5a5   : > { %v1290_v26 = vpop.permute.xlu1 %1289 }
 0x5a6   : > { %v1295_v28 = vpack.c.bf16 %v1290_v26, %v1290_v26 }
 0x5c2   : > { %v1049_v60 = vpop.xlane.xlu0 %1048 }
 0x5c3   : > { %2650 = vrcp.f32 %v1049_v60 }
 0x5c6   : > { %v1052_v61 = vpop.xlane.xlu0 %1051 }
 0x5c7   : > { %2652 = vrcp.f32 %v1052_v61 }
 0x5ca   : > { %v1055_v62 = vpop.xlane.xlu0 %1054 }
 0x5cb   : > { %2654 = vrcp.f32 %v1055_v62 }
 0x5cd   : > { %v2651_v63 = vpop.eup %2650 }
 0x5ce   : > { %v1065_v1 = vmul.f32 %v2651_v63, %v2643_v44  ;;  %v1361_v11 = vpop.permute.xlu0 %1360 }
 0x5cf   : > { %v1366_v15 = vsel %vm826_vm3, %v1361_v11, 0 }
 0x5d0   : > { %v1069_v4 = vpack.c.bf16 %v1065_v1, %v1065_v1 }
 0x5d1   : > { %v2653_v5 = vpop.eup %2652 }
 0x5d2   : > { %v1066_v7 = vmul.f32 %v2653_v5, %v2645_v48  ;;  %2419 = vmatmul.mubr.msk.bf16.vlgmr.msra.gmra.mrb[12].mxu0 %vm826_vm3, %v1069_v4  ;;  %v1410_v16 = vpop.permute.xlu0 %1409 }
 0x5d3   : > { %2429 = vmatpush3.bf16.msra.mxu0 %v1223_v6  ;;  %2430 = vmatprep.mubr.msk.bf16.mxu0 %vm2926_vm2, %v2925_v17  ;;  %v1415_v20 = vsel %vm826_vm3, %v1410_v16, 0 }
 0x5d4   : > { %v1070_v9 = vpack.c.bf16 %v1066_v7, %v1066_v7  ;;  %2440 = vmatprep.subr.bf16.mxu0 %v2925_v17 }
 0x5d5   : > { %v2655_v10 = vpop.eup %2654 }
 0x5d6   : > { %v1067_v13 = vmul.f32 %v2655_v10, %v2647_v50  ;;  %2425 = vmatmul.mubr.msk.bf16.vlgmr.msra.gmra.mrb[12].mxu1 %vm826_vm3, %v1070_v9  ;;  %v1287_v23 = vpop.permute.xlu0 %1286 }
 0x5d7   : > { %2435 = vmatpush3.bf16.xpose.msra.mxu1 %v1317_v12  ;;  %2436 = vmatprep.mubr.msk.bf16.mxu1 %vm2926_vm2, %v2925_v17  ;;  %v1294_v25 = vpack.c.bf16 %v1287_v23, %v1287_v23 }
 0x5d8   : > { %v1071_v14 = vpack.c.bf16 %v1067_v13, %v1067_v13  ;;  %2446 = vmatprep.subr.bf16.mxu1 %v2925_v17 }
 0x5da   : > { %2431 = vmatmul.mubr.msk.bf16.vlgmr.msra.gmra.mrb[16].mxu0 %vm826_vm3, %v1071_v14 }
 0x5db   : > { %2442 = vmatprep.mubr.msk.bf16.mxu0 %vm2926_vm2, %v2925_v17 }
 0x5dc   : > { %2441 = vmatpush3.bf16.xpose.msra.mxu0 %v1366_v15 }
 0x5dd   : > { %2452 = vmatprep.subr.bf16.mxu0 %v2925_v17 }
 0x5de   : > { %2437 = vmatmul.mubr.msk.bf16.vlgmr.msra.gmra.mrb[16].mxu1 %vm826_vm3, %v1292_v19 }
 0x5df   : > { %2447 = vmatpush3.bf16.xpose.msra.mxu1 %v1415_v20  ;;  %2448 = vmatprep.mubr.msk.bf16.mxu1 %vm2926_vm2, %v2925_v17 }
 0x5e0   : > { %2458 = vmatprep.subr.bf16.mxu1 %v2925_v17 }
 0x5e3   : > { %2443 = vmatmul.mubr.msk.bf16.vlgmr.msra.gmra.mrb[20].mxu0 %vm826_vm3, %v1293_v22 }
 0x5e4   : > { %2453 = vmatpush3.bf16.xpose.msra.mxu0 %v1464_v24  ;;  %2454 = vmatprep.mubr.msk.bf16.mxu0 %vm2926_vm2, %v2925_v17 }
 0x5e5   : > { %2464 = vmatprep.subr.bf16.mxu0 %v2925_v17 }
 0x5e6   : > { %2449 = vmatmul.mubr.msk.bf16.vlgmr.msra.gmra.mrb[20].mxu1 %vm826_vm3, %v1294_v25 }
 0x5e7   : > { %2460 = vmatprep.mubr.msk.bf16.mxu1 %vm2926_vm2, %v2925_v17 }
 0x5eb   : > { %2455 = vmatmul.mubr.msk.bf16.vlgmr.msra.gmra.mrb[24].mxu0 %vm826_vm3, %v1295_v28 }
 0x5ec   : > { %2466 = vmatprep.mubr.msk.bf16.mxu0 %vm2926_vm2, %v2925_v17 }
 0x648   : > { %v3455_v29 = vpop.f32.mrb[8].mxu1 }
 0x649   : > { %v2414_v30 = vpop.f32.mrb[9].mxu1 }
 0x64a   : > { %v1118_v31 = vpop.f32.mrb[10].mxu1 }
 0x64b   : > { %v2415_v32 = vpop.f32.mrb[11].mxu1 }
 0x6a5   : > { %v3457_v33 = vpop.f32.mrb[12].mxu0 }
 0x6a6   : > { %v2420_v34 = vpop.f32.mrb[13].mxu0 }
 0x6a7   : > { %v1166_v35 = vpop.f32.mrb[14].mxu0 }
 0x6a8   : > { %v2421_v36 = vpop.f32.mrb[15].mxu0 }
 0x6a9   : > { %v3459_v37 = vpop.f32.mrb[12].mxu1 }
 0x6aa   : > { %v2426_v40 = vpop.f32.mrb[13].mxu1 }
 0x6ab   : > { %v1214_v38 = vpop.f32.mrb[14].mxu1 }
 0x6ac   : > { %v2427_v41 = vpop.f32.mrb[15].mxu1 }
 0x6ad   : > { %v3461_v42 = vpop.f32.mrb[16].mxu0 }
 0x6ae   : > { %v2432_v43 = vpop.f32.mrb[17].mxu0 }
 0x6af   : > { %v1262_v44 = vpop.f32.mrb[18].mxu0 }
 0x6b0   : > { %v2433_v45 = vpop.f32.mrb[19].mxu0 }
 0x6b1   : > { %v1353_v46 = vpop.f32.mrb[16].mxu1 }
 0x6b2   : > { %v2438_v47 = vpop.f32.mrb[17].mxu1  ;;  %v1506_v48 = vsel %vm826_vm3, %v1353_v46, -inf }
 0x6b3   : > { %1507 = vmax.xlane.f32.xlu0 %v1506_v48  ;;  %v1356_v49 = vpop.f32.mrb[18].mxu1 }
 0x6b4   : > { %v2439_v50 = vpop.f32.mrb[19].mxu1 }
 0x6b6   : > { %v1402_v51 = vpop.f32.mrb[20].mxu0 }
 0x6b7   : > { %v2444_v54 = vpop.f32.mrb[21].mxu0  ;;  %v1509_v55 = vsel %vm826_vm3, %v1402_v51, -inf }
 0x6b8   : > { %1510 = vmax.xlane.f32.xlu1 %v1509_v55  ;;  %v1405_v56 = vpop.f32.mrb[22].mxu0 }
 0x6b9   : > { %v2445_v57 = vpop.f32.mrb[23].mxu0  ;;  %v1451_v58 = vpop.f32.mrb[20].mxu1  ;;  %v2628_v56 = vld [vmem:[%s3267_s16] sm:$0xff]  }
 0x6ba   : > { %v2450_v59 = vpop.f32.mrb[21].mxu1  ;;  %v1512_v60 = vsel %vm826_vm3, %v1451_v58, -inf }
 0x6bb   : > { %1513 = vmax.xlane.f32.xlu0 %v1512_v60  ;;  %v1454_v61 = vpop.f32.mrb[22].mxu1 }
 0x6bc   : > { %v2451_v62 = vpop.f32.mrb[23].mxu1 }
 0x6be   : > { %v1500_v63 = vpop.f32.mrb[24].mxu0 }
 0x6bf   : > { %v2456_v0 = vpop.f32.mrb[25].mxu0  ;;  %v1515_v1 = vsel %vm826_vm3, %v1500_v63, -inf }
 0x6c0   : > { %1516 = vmax.xlane.f32.xlu0 %v1515_v1  ;;  %v1503_v4 = vpop.f32.mrb[26].mxu0 }
 0x6c1   : > { %v2457_v5 = vpop.f32.mrb[27].mxu0 }
 0x740   : > { %v1508_v6 = vpop.xlane.xlu0 %1507 }
 0x741   : > { %v1518_v7 = vsub.f32 %v1353_v46, %v1508_v6 }
 0x743   : > { %v1522_v8 = vmul.f32 1.442695, %v1518_v7 }
 0x745   : > { %2656 = vpow2.f32 %v1522_v8  ;;  %v1511_v9 = vpop.xlane.xlu1 %1510  ;;  %v2629_v8 = vld [vmem:[%s3267_s16 + $0x8] sm:$0xff]   ;;  %s3660_s16 = scalar_lea.vmem [#allocation6], %s3232_s10 }
 0x746   : > { %v1519_v10 = vsub.f32 %v1402_v51, %v1511_v9 }
 0x748   : > { %v1524_v11 = vmul.f32 1.442695, %v1519_v10  ;;  %v1514_v12 = vpop.xlane.xlu0 %1513 }
 0x749   : > { %v1520_v13 = vsub.f32 %v1451_v58, %v1514_v12 }
 0x74a   : > { %2658 = vpow2.f32 %v1524_v11 }
 0x74b   : > { %v1526_v14 = vmul.f32 1.442695, %v1520_v13 }
 0x74d   : > { %2660 = vpow2.f32 %v1526_v14  ;;  %v1517_v22 = vpop.xlane.xlu0 %1516 }
 0x74e   : > { %v1521_v23 = vsub.f32 %v1500_v63, %v1517_v22 }
 0x74f   : > { %v2657_v15 = vpop.eup %2656 }
 0x750   : > { %v1530_v16 = vsel %vm826_vm3, %v2657_v15, 0.0  ;;  %v1528_v24 = vmul.f32 1.442695, %v1521_v23 }
 0x751   : > { %1531 = vadd.xlane.f32.xlu0 %v1530_v16 }
 0x752   : > { %2662 = vpow2.f32 %v1528_v24 }
 0x754   : > { %v2659_v18 = vpop.eup %2658 }
 0x755   : > { %v1533_v19 = vsel %vm826_vm3, %v2659_v18, 0.0 }
 0x756   : > { %1534 = vadd.xlane.f32.xlu1 %v1533_v19 }
 0x757   : > { %v2661_v20 = vpop.eup %2660 }
 0x758   : > { %v1536_v21 = vsel %vm826_vm3, %v2661_v20, 0.0 }
 0x759   : > { %1537 = vadd.xlane.f32.xlu0 %v1536_v21 }
 0x75c   : > { %v2663_v25 = vpop.eup %2662 }
 0x75d   : > { %v1539_v26 = vsel %vm826_vm3, %v2663_v25, 0.0 }
 0x767   : > { %1606 = vrot.lane.b32.xlu1 %v3407_v52, %s2931_s12 }
 0x76b   : > { %1654 = vrot.lane.b32.xlu1 %v3411_v53, %s2931_s12 }
 0x76f   : > { %1558 = vrot.lane.b32.xlu0 %v3385_v27, %s2931_s12 }
 0x78f   : > { %1540 = vadd.xlane.f32.xlu1 %v1539_v26 }
 0x7a0   : > { %1702 = vrot.lane.b32.xlu1 %v3394_v39, %s2931_s12 }
 0x7de   : > { %v1532_v28 = vpop.xlane.xlu0 %1531 }
 0x7df   : > { %2664 = vrcp.f32 %v1532_v28 }
 0x7e3   : > { %v1535_v52 = vpop.xlane.xlu1 %1534 }
 0x7e4   : > { %2666 = vrcp.f32 %v1535_v52 }
 0x7e6   : > { %v1538_v30 = vpop.xlane.xlu0 %1537 }
 0x7e7   : > { %v1607_v53 = vpop.permute.xlu1 %1606  ;;  %2668 = vrcp.f32 %v1538_v30  ;;  %v2310_v30 = vld [vmem:[%s3660_s16] ss:$0 sm:$0xff] }
 0x7e8   : > { %v1612_v27 = vsel %vm1077_vm4, %v1607_v53, 0 }
 0x7e9   : > { %v2665_v31 = vpop.eup %2664  ;;  %2465 = vmatpush3.bf16.msra.mxu0 %v1612_v27 }
 0x7ea   : > { %v1550_v32 = vmul.f32 %v2665_v31, %v2657_v15  ;;  %v1559_v34 = vpop.permute.xlu0 %1558  ;;  %2476 = vmatprep.subr.bf16.mxu0 %v2925_v17 }
 0x7eb   : > { %v1564_v35 = vsel %vm1077_vm4, %v1559_v34, 0  ;;  %v1655_v36 = vpop.permute.xlu1 %1654 }
 0x7ec   : > { %2459 = vmatpush3.bf16.msra.mxu1 %v1564_v35  ;;  %v1554_v39 = vpack.c.bf16 %v1550_v32, %v1550_v32  ;;  %v1660_v41 = vsel %vm1077_vm4, %v1655_v36, 0 }
 0x7ed   : > { %2470 = vmatprep.subr.bf16.mxu1 %v2925_v17 }
 0x7ee   : > { %v2667_v40 = vpop.eup %2666 }
 0x7ef   : > { %v1551_v38 = vmul.f32 %v2667_v40, %v2659_v18  ;;  %2461 = vmatmul.mubr.msk.bf16.vlgmr.msra.gmra.mrb[24].mxu1 %vm826_vm3, %v1554_v39 }
 0x7f0   : > { %2471 = vmatpush3.bf16.msra.mxu1 %v1660_v41  ;;  %2472 = vmatprep.mubr.msk.bf16.mxu1 %vm2926_vm2, %v2925_v17 }
 0x7f1   : > { %v2669_v43 = vpop.eup %2668  ;;  %v1555_v44 = vpack.c.bf16 %v1551_v38, %v1551_v38  ;;  %2482 = vmatprep.subr.bf16.mxu1 %v2925_v17 }
 0x7f2   : > { %v1552_v45 = vmul.f32 %v2669_v43, %v2661_v20 }
 0x7f3   : > { %2467 = vmatmul.mubr.msk.bf16.vlgmr.msra.gmra.mrb[28].mxu0 %vm826_vm3, %v1555_v44 }
 0x7f4   : > { %v1556_v46 = vpack.c.bf16 %v1552_v45, %v1552_v45  ;;  %2478 = vmatprep.mubr.msk.bf16.mxu0 %vm2926_vm2, %v2925_v17 }
 0x7f7   : > { %2473 = vmatmul.mubr.msk.bf16.vlgmr.msra.gmra.mrb[28].mxu1 %vm826_vm3, %v1556_v46 }
 0x7f8   : > { %2486 = vmatprep.mubr.msk.bf16.mxu1 %vm2926_vm2, %v2925_v17  ;;  %2483 = vmatpush3.bf16.msra.mxu1 %v2628_v56 }
 0x7f9   : > { %2484 = vmatprep.subr.bf16.mxu1 %v2925_v17 }
 0x7fc   : > { %2485 = vmatpush3.bf16.msra.mxu1 %v2629_v8  ;;  %v2633_v8 = vld [vmem:[%s3277_s23 + $0x8] sm:$0xff]  }
 0x7fd   : > { %2498 = vmatprep.subr.bf16.mxu1 %v2925_v17 }
 0x81c   : > { %v1541_v47 = vpop.xlane.xlu1 %1540 }
 0x81d   : > { %2670 = vrcp.f32 %v1541_v47 }
 0x820   : > { %v1703_v48 = vpop.permute.xlu1 %1702 }
 0x821   : > { %v1708_v49 = vsel %vm1077_vm4, %v1703_v48, 0  ;;  %v2630_v48 = vld [vmem:[%s3272_s18] sm:$0xff]  }
 0x822   : > { %2477 = vmatpush3.bf16.msra.mxu0 %v1708_v49  ;;  %v2631_v49 = vld [vmem:[%s3272_s18 + $0x8] sm:$0xff]   ;;  %s3662_s18 = scalar_lea.vmem [#allocation9], %s3232_s10 }
 0x823   : > { %2490 = vmatprep.subr.bf16.mxu0 %v2925_v17 }
 0x827   : > { %v2671_v50 = vpop.eup %2670 }
 0x828   : > { %v1553_v51 = vmul.f32 %v2671_v50, %v2663_v25 }
 0x82a   : > { %v1557_v54 = vpack.c.bf16 %v1553_v51, %v1553_v51 }
 0x82c   : > { %2479 = vmatmul.mubr.msk.bf16.vlgmr.msra.gmra.mrb[32].mxu0 %vm826_vm3, %v1557_v54 }
 0x82d   : > { %2494 = vmatprep.mubr.msk.bf16.mxu0 %vm2926_vm2, %v2925_v17  ;;  %2491 = vmatpush3.bf16.msra.mxu0 %v2630_v48 }
 0x82e   : > { %2492 = vmatprep.subr.bf16.mxu0 %v2925_v17 }
 0x831   : > { %2493 = vmatpush3.bf16.msra.mxu0 %v2631_v49 }
 0x8c2   : > { %v1600_v55 = vpop.f32.mrb[24].mxu1 }
 0x8c3   : > { %v2462_v57 = vpop.f32.mrb[25].mxu1 }
 0x8c4   : > { %v1603_v58 = vpop.f32.mrb[26].mxu1 }
 0x8c5   : > { %v2463_v59 = vpop.f32.mrb[27].mxu1 }
 0x8c6   : > { %v1648_v60 = vpop.f32.mrb[28].mxu0 }
 0x8c7   : > { %v2611_v61 = vpack.i.bf16 %v1648_v60, %v3457_v33  ;;  %v2468_v62 = vpop.f32.mrb[29].mxu0  ;;  %v2311_v60 = vld [vmem:[%s3661_s27] ss:$0 sm:$0xff] }
 0x8c8   : > { %v1651_v63 = vpop.f32.mrb[30].mxu0 }
 0x8c9   : > { %2612 = vrot.lane.b32.xlu0 %v2611_v61, %s2932_s7  ;;  %v2469_v0 = vpop.f32.mrb[31].mxu0 }
 0x8ca   : > { %v1696_v1 = vpop.f32.mrb[28].mxu1  ;;  %v2312_v0 = vld [vmem:[%s3662_s18] ss:$0 sm:$0xff] }
 0x8cb   : > { %v2616_v4 = vpack.i.bf16 %v1696_v1, %v3459_v37  ;;  %v2474_v5 = vpop.f32.mrb[29].mxu1 }
 0x8cc   : > { %v1699_v6 = vpop.f32.mrb[30].mxu1 }
 0x8cd   : > { %2617 = vrot.lane.b32.xlu1 %v2616_v4, %s2933_s20  ;;  %v2475_v7 = vpop.f32.mrb[31].mxu1 }
 0x8ce   : > { %v2632_v7 = vld [vmem:[%s3277_s23] sm:$0xff]  }
 0x8ff   : > { %v1744_v9 = vpop.f32.mrb[32].mxu0 }
 0x900   : > { %v2621_v33 = vpack.i.bf16 %v1744_v9, %v3461_v42  ;;  %v2480_v10 = vpop.f32.mrb[33].mxu0  ;;  %v2634_v9 = vld [vmem:[%s3277_s23 + $0x10] sm:$0xff]  }
 0x901   : > { %v1747_v11 = vpop.f32.mrb[34].mxu0  ;;  %v2313_v10 = vld [vmem:[%s567_s15] ss:$0 sm:$0xff] }
 0x902   : > { %2622 = vrot.lane.b32.xlu0 %v2621_v33, %s2934_s25  ;;  %v2481_v12 = vpop.f32.mrb[35].mxu0  ;;  %v2635_v33 = vld [vmem:[%s3277_s23 + $0x18] sm:$0xff]  }
 0x93b   : > { %v2613_v13 = vpop.permute.xlu0 %2612 }
 0x93c   : > { %v2615_v37 = vunpack.i.h.bf16 %v2613_v13  ;;  %v2614_v15 = vunpack.i.l.bf16 %v2613_v13 }
 0x93e   : > { %v1762_v20 = vsel %vm826_vm3, %v1600_v55, %v2615_v37  ;;  %v1277_v42 = vsel %vm826_vm3, %v3455_v29, %v2614_v15 }
 0x93f   : > { %v2618_v14 = vpop.permute.xlu1 %2617 }
 0x940   : > { %v2620_v16 = vunpack.i.h.bf16 %v2618_v14  ;;  %v2619_v18 = vunpack.i.l.bf16 %v2618_v14 }
 0x942   : > { %v1279_v23 = vsel %vm1278_vm5, %v1277_v42, %v2619_v18  ;;  %v1763_v24 = vsel %vm1278_vm5, %v1762_v20, %v2620_v16 }
 0x974   : > { %v2623_v19 = vpop.permute.xlu0 %2622 }
 0x975   : > { %v2625_v21 = vunpack.i.h.bf16 %v2623_v19  ;;  %v2624_v22 = vunpack.i.l.bf16 %v2623_v19 }
 0x977   : > { %v1764_v25 = vsel %vm1280_vm6, %v1763_v24, %v2625_v21  ;;  %v1281_v26 = vsel %vm1280_vm6, %v1279_v23, %v2624_v22 }
 0x978   : > { %v1765_v28 = vpack.c.bf16 %v1764_v25, %v1281_v26  ;;  %v2317_v26 = vld [vmem:[%s672_s19] ss:$0 sm:$0xff] }
 0x97a   : > { %2487 = vmatmul.mubr.msk.bf16.vlgmr.msra.gmra.mrb[32].mxu1 %vm688_vm1, %v1765_v28 }
 0x97b   : > { %2506 = vmatprep.mubr.msk.bf16.mxu1 %vm2926_vm2, %v2925_v17  ;;  %2499 = vmatpush3.bf16.msra.mxu1 %v2632_v7 }
 0x97c   : > { %2500 = vmatprep.subr.bf16.mxu1 %v2925_v17 }
 0x97f   : > { %2501 = vmatpush3.bf16.msra.mxu1 %v2633_v8 }
 0x980   : > { %2502 = vmatprep.subr.bf16.mxu1 %v2925_v17 }
 0x983   : > { %2503 = vmatpush3.bf16.msra.mxu1 %v2634_v9 }
 0x984   : > { %2504 = vmatprep.subr.bf16.mxu1 %v2925_v17 }
 0x987   : > { %2505 = vmatpush3.bf16.msra.mxu1 %v2635_v33 }
 0xa4d   : > { %v1819_v52 = vpop.f32.mrb[32].mxu1 }
 0xa4e   : > { %v1826_v53 = vadd.f32 %v1819_v52, %v3285_v2  ;;  %v2488_v27 = vpop.f32.mrb[33].mxu1 }
 0xa4f   : > { %v1822_v31 = vpop.f32.mrb[34].mxu1 }
 0xa50   : > { %v3516_v29 = vadd.f32 %v2310_v30, %v1826_v53  ;;  %v1827_v32 = vadd.f32 %v1822_v31, %v3287_v3  ;;  %v2489_v34 = vpop.f32.mrb[35].mxu1 }
 0xa52   : > { %v3519_v35 = vadd.f32 %v2310_v30, %v1827_v32  ;;  %v1839_v36 = vsel %vm688_vm1, %v3516_v29, 0.0 }
 0xa53   : > { %1840 = vadd.xlane.f32.xlu1 %v1839_v36 }
 0xa54   : > { %v1842_v39 = vsel %vm688_vm1, %v3519_v35, 0.0 }
 0xa55   : > { %1843 = vadd.xlane.f32.xlu0 %v1842_v39 }
 0xae0   : > { %v1841_v2 = vpop.xlane.xlu1 %1840 }
 0xae1   : > { %v1845_v40 = vmul.f32 0.03125, %v1841_v2 }
 0xae2   : > { %v1844_v38 = vpop.xlane.xlu0 %1843 }
 0xae3   : > { %v1847_v41 = vsub.f32 %v3516_v29, %v1845_v40  ;;  %v1846_v43 = vmul.f32 0.03125, %v1844_v38 }
 0xae5   : > { %v1848_v3 = vsub.f32 %v3519_v35, %v1846_v43  ;;  %v1849_v44 = vmul.f32 %v1847_v41, %v1847_v41 }
 0xae7   : > { %v1851_v45 = vsel %vm688_vm1, %v1849_v44, 0.0  ;;  %v1850_v46 = vmul.f32 %v1848_v3, %v1848_v3 }
 0xae8   : > { %1852 = vadd.xlane.f32.xlu0 %v1851_v45 }
 0xae9   : > { %v1854_v47 = vsel %vm688_vm1, %v1850_v46, 0.0 }
 0xaec   : > { %1855 = vadd.xlane.f32.xlu0 %v1854_v47 }
 0xb75   : > { %v1853_v50 = vpop.xlane.xlu0 %1852 }
 0xb76   : > { %v1857_v51 = vmul.f32 0.03125, %v1853_v50 }
 0xb78   : > { %v1859_v54 = vadd.f32 1e-05, %v1857_v51 }
 0xb79   : > { %v1856_v55 = vpop.xlane.xlu0 %1855 }
 0xb7a   : > { %2672 = vrsqrt.f32 %v1859_v54  ;;  %v1858_v56 = vmul.f32 0.03125, %v1856_v55 }
 0xb7c   : > { %v1860_v57 = vadd.f32 1e-05, %v1858_v56 }
 0xb7e   : > { %2674 = vrsqrt.f32 %v1860_v57 }
 0xb84   : > { %v2673_v58 = vpop.eup %2672 }
 0xb85   : > { %v1863_v59 = vmul.f32 %v2673_v58, %v1847_v41 }
 0xb87   : > { %v1871_v62 = vmul.f32 %v2311_v60, %v1863_v59 }
 0xb88   : > { %v2675_v61 = vpop.eup %2674 }
 0xb89   : > { %v1864_v63 = vmul.f32 %v2675_v61, %v1848_v3  ;;  %v1879_v4 = vadd.f32 %v2312_v0, %v1871_v62 }
 0xb8b   : > { %v1872_v1 = vmul.f32 %v2311_v60, %v1864_v63 }
 0xb8d   : > { %v1880_v5 = vadd.f32 %v2312_v0, %v1872_v1 }
 0xb8f   : > { %v1881_v6 = vpack.c.bf16 %v1880_v5, %v1879_v4 }
 0xb91   : > { %2495 = vmatmul.mubr.msk.bf16.vlgmr.msra.gmra.mrb[36].mxu0 %vm688_vm1, %v1881_v6 }
 0xc64   : > { %v1942_v11 = vpop.f32.mrb[36].mxu0 }
 0xc65   : > { %v1943_v12 = vadd.f32 %v2313_v10, %v1942_v11  ;;  %v2496_v13 = vpop.f32.mrb[37].mxu0 }
 0xc66   : > { %v1945_v14 = vpop.f32.mrb[38].mxu0 }
 0xc67   : > { %v1951_v37 = vmul.f32 0.70710677, %v1943_v12  ;;  %v1946_v15 = vadd.f32 %v2313_v10, %v1945_v14  ;;  %v2497_v16 = vpop.f32.mrb[39].mxu0  ;;  %v1949_v21 = vmul.f32 0.5, %v1943_v12 }
 0xc69   : > { %2676 = verf.f32 %v1951_v37  ;;  %v1952_v18 = vmul.f32 0.70710677, %v1946_v15  ;;  %v1950_v17 = vmul.f32 0.5, %v1946_v15 }
 0xc6b   : > { %2678 = verf.f32 %v1952_v18 }
 0xc73   : > { %v2677_v19 = vpop.eup %2676 }
 0xc74   : > { %v1955_v20 = vadd.f32 1.0, %v2677_v19 }
 0xc75   : > { %v2679_v42 = vpop.eup %2678 }
 0xc76   : > { %v1956_v22 = vadd.f32 1.0, %v2679_v42  ;;  %v1957_v23 = vmul.f32 %v1955_v20, %v1949_v21 }
 0xc78   : > { %v1958_v24 = vmul.f32 %v1956_v22, %v1950_v17 }
 0xc7a   : > { %v1959_v25 = vpack.c.bf16 %v1958_v24, %v1957_v23 }
 0xc7c   : > { %2507 = vmatmul.mubr.msk.bf16.vlgmr.msra.gmra.mrb[36].mxu1 %vm1999_vm7, %v1959_v25 }
 0xd4f   : > { %v2037_v28 = vpop.f32.mrb[36].mxu1 }
 0xd50   : > { %v2038_v52 = vadd.f32 %v2317_v26, %v2037_v28  ;;  %v2508_v30 = vpop.f32.mrb[37].mxu1  ;;  %2051 = sbr.rel (%p2323_p9) target bundleno = 3415 (0xd57), region = 96 }
 0xd51   : > { %v2040_v53 = vpop.f32.mrb[38].mxu1 }
 0xd52   : > { %v2044_v27 = vadd.f32 %v2038_v52, %v3516_v29  ;;  %v2041_v31 = vadd.f32 %v2317_v26, %v2040_v53  ;;  %v2509_v32 = vpop.f32.mrb[39].mxu1 }
 0xd54   : > { %2046 = vst.msk [vmem:[#allocation2] sm:$0xff] %vm688_vm1, %v2044_v27  ;;  %v2045_v34 = vadd.f32 %v2041_v31, %v3519_v35  ;;  %2052 = vst.msk [vmem:[#allocation12] sm:$0xff] (!%p2323_p9), %vm688_vm1, %v2044_v27 }
 0xd56   : > { %2047 = vst.msk [vmem:[#allocation2 + $0x8] sm:$0xff] %vm688_vm1, %v2045_v34  ;;  %2053 = vst.msk [vmem:[#allocation12 + $0x8] sm:$0xff] (!%p2323_p9), %vm688_vm1, %v2045_v34 }
 0xd57 PF: > { %p2546_p12 = scmp.eq.s32.totalorder %s3127_s5, 1  ;;  %s2935_s26 = smov [#allocation12]  }
 0xd58   : > { %s2063_s19 = sshll.u32 %s2935_s26, 4  ;;  %s2064_s19 = int_to_ptr.vmem [resolvable:$true] %s2063_s19 }
 0xd59   : > { %s2828_s4 = scalar_lea.vmem %s2064_s19, 256  ;;  %p2835_p6 = scmp.lt.s32.totalorder %s2064_s19, %s2064_s19 }
 0xd5a   : > { %p2829_p13 = scmp.ne.s32.totalorder %s2064_s19, %s2828_s4  ;;  %p2836_p0 = scmp.lt.s32.totalorder %s2828_s4, %s2828_s4 }
 0xd5c   : > { %p2830_p8 = pnand %p2829_p13, %p2546_p12  ;;  %p2837_p1 = por %p2836_p0, %p2835_p6 }
 0xd5e   : > { %p2831_p2 = pneg %p2830_p8 }
 0xd60   : > { %p2838_p7 = pnand %p2837_p1, %p2831_p2 }
 0xd62   : > { %2841 = shalt.err (!%p2838_p7)
}
 0xd63   : > { %s3664_s11 = sld [smem:[#allocation28_spill]] }
 0xd69   : > { %s2842_s30 = scalar_lea.hbm %s3664_s11, 256 }
 0xd6a   : > { %p2843_p10 = scmp.ne.s32.totalorder %s3664_s11, %s2842_s30  ;;  %p2848_p3 = scmp.lt.u32.totalorder %s2842_s30, %s3664_s11 }
 0xd6c   : > { %p2844_p11 = pnand %p2843_p10, %p2546_p12 }
 0xd6e   : > { %p2845_p5 = pneg %p2844_p11 }
 0xd70   : > { %p2850_p4 = pnand %p2848_p3, %p2845_p5 }
 0xd72   : > { %2853 = shalt.err (!%p2850_p4)
}
 0xd73   : > { %s2936_s21 = smov 128  }
 0xd74   : > { %2523 = dma.vmem_to_hbm [thread:$0]  (%p2546_p12), %s2064_s19, 256, %s3664_s11, [#allocation5], %s2936_s21, %s2936_s21, %s2932_s7  }
 0xd75   : > { %2891 = dma.done.wait (%p2546_p12), [#allocation5], 256  }
 0xd76   : > { %2893 = vsyncadd (%p2546_p12), [#allocation5], 4294967040 }
 0xd77 PF: > { %s3665_s20 = sld [smem:[#allocation19_spill]]  ;;  %s3666_s25 = sld [smem:[#allocation17_spill]] }
 0xd78   : > { %s3667_s23 = sld [smem:[#allocation21_spill]]  ;;  %s3668_s24 = sld [smem:[#allocation18_spill]] }
 0xd79   : > { %s3669_s16 = sld [smem:[#allocation20_spill]]  ;;  %s3670_s21 = smov %s2900_s22 }
 0xd7d   : > { %s30_s26 = sadd.s32 1, %s3665_s20   ;;  %s3671_s22 = smov %s3666_s25 }
 0xd7e   : > { %p27_p9 = scmp.ge.s32.totalorder %s30_s26, 4  }
 0xd7f   : > { %s3672_s25 = smov %s3669_s16 }
 0xd80   :  { %29 = sbr.rel (!%p27_p9) target bundleno = 16 (0x10), region = 176 }
 0xd87   :  { %2079 = vsyncpa [#allocation4], 1 }
 0xd88   :  { %2081 = vsyncpa [#allocation4 + $0x1], 1 }
 0xd89   :  { %2082 = vsyncpa [#allocation7], 1 }
 0xd8a   :  { %2084 = vsyncpa [#allocation7 + $0x1], 1 }
 0xd8b   :  { %2085 = vsyncpa [#allocation10], 1 }
 0xd8c   :  { %2087 = vsyncpa [#allocation10 + $0x1], 1 }
 0xd8d   :  { %2088 = vsyncpa [#allocation5], 1 }
 0xd8e   :  { %2090 = vsyncpa [#allocation5 + $0x1], 1 }

</bundles_post_ra>
